<compile_context>
chip_gen: v7x
topology: tpu7x:2x2x1
jax: 0.10.0
libtpu: 0.0.40
codegen_flags: <defaults>
</compile_context>

<pallas_src>
from functools import partial
from math import gcd

import jax
import jax.numpy as jnp
from jax import lax
from jax.experimental import pallas as pl
from jax.experimental.pallas import tpu as pltpu

EPS = 1e-5  # PyTorch GroupNorm default


def _round_up(a, m):
    return (a + m - 1) // m * m


# ----------------------------------------------------------------------------
# kernel
# ----------------------------------------------------------------------------
def decoder_mlp_kernel(x_ref, w1_ref, w2_ref, w3_ref, prm_ref,
                       gmat_s_ref, gmat_t_ref, o_ref, *, group_size):
    x = x_ref[...]                    # (TB, C_pad) f32
    gmat_s = gmat_s_ref[...]          # (C_pad, G), pre-scaled by 1/group_size
    gmat_t = gmat_t_ref[...]          # (G, C_pad)

    c = x.shape[1]
    out_w = o_ref.shape[1]
    gamma1 = prm_ref[0:1, :c]
    beta1 = prm_ref[1:2, :c]
    gamma2 = prm_ref[2:3, :c]
    beta2 = prm_ref[3:4, :c]
    b3 = prm_ref[4:5, :out_w]

    def group_norm(h, gamma, beta):
        # per-group mean, broadcast back to channels (small MXU matmuls)
        mean_g = jnp.dot(h, gmat_s, preferred_element_type=jnp.float32)       # (TB, G)
        mean_c = jnp.dot(mean_g, gmat_t, preferred_element_type=jnp.float32)  # (TB, C)
        d = h - mean_c
        if group_size == 2:
            # Both members of a 2-wide group share the same squared deviation,
            # so per-channel variance == d*d; skip the two variance matmuls.
            istd_c = lax.rsqrt(d * d + EPS)
        else:
            var_g = jnp.dot(d * d, gmat_s, preferred_element_type=jnp.float32)  # (TB, G)
            istd_c = jnp.dot(lax.rsqrt(var_g + EPS), gmat_t,
                             preferred_element_type=jnp.float32)                # (TB, C)
        return d * istd_c * gamma + beta

    h = jnp.dot(x, w1_ref[...], preferred_element_type=jnp.float32)       # linear1 (no bias)
    h = jnp.maximum(group_norm(h, gamma1, beta1), 0.0)                     # norm1 + relu
    h = jnp.dot(h, w2_ref[...], preferred_element_type=jnp.float32)        # linear2 (no bias)
    h = group_norm(h, gamma2, beta2)                                       # norm2
    h = jnp.maximum(h + x, 0.0)                                            # residual + relu
    out = jnp.dot(h, w3_ref[...], preferred_element_type=jnp.float32) + b3  # linear3
    o_ref[...] = out.astype(o_ref.dtype)


# ----------------------------------------------------------------------------
# parameter preparation (PyTorch (out,in) layout -> kernel layout)
# ----------------------------------------------------------------------------
def prepare_params(w1, w2, w3, b3, gamma1, beta1, gamma2, beta2, num_groups,
                   *, pad_output=True):
    hidden, input_size = w1.shape
    out_size = w3.shape[0]
    assert input_size == hidden, "residual path requires input_size == hidden_size"
    group_size = hidden // num_groups

    c_pad = _round_up(hidden, 128)
    out_w = _round_up(out_size, 128) if pad_output else out_size
    pk_w = max(c_pad, out_w)                     # width of the packed param slab

    # channel -> group indicator, zero rows/cols for padded channels
    ch = jnp.arange(hidden) // group_size
    gmat = jax.nn.one_hot(ch, num_groups, dtype=jnp.float32)           # (hidden, G)
    gmat_s = jnp.zeros((c_pad, num_groups), jnp.float32).at[:hidden, :].set(
        gmat / group_size)                                              # fold 1/gs
    gmat_t = jnp.zeros((num_groups, c_pad), jnp.float32).at[:, :hidden].set(gmat.T)

    w1_t = jnp.zeros((c_pad, c_pad), jnp.float32).at[:input_size, :hidden].set(
        jnp.asarray(w1, jnp.float32).T)
    w2_t = jnp.zeros((c_pad, c_pad), jnp.float32).at[:hidden, :hidden].set(
        jnp.asarray(w2, jnp.float32).T)
    w3_t = jnp.zeros((c_pad, out_w), jnp.float32).at[:hidden, :out_size].set(
        jnp.asarray(w3, jnp.float32).T)

    # gamma1 / beta1 / gamma2 / beta2 / b3 packed into one (8, pk_w) resident slab
    prm = jnp.zeros((8, pk_w), jnp.float32)
    prm = prm.at[0, :hidden].set(jnp.asarray(gamma1, jnp.float32))
    prm = prm.at[1, :hidden].set(jnp.asarray(beta1, jnp.float32))
    prm = prm.at[2, :hidden].set(jnp.asarray(gamma2, jnp.float32))
    prm = prm.at[3, :hidden].set(jnp.asarray(beta2, jnp.float32))
    prm = prm.at[4, :out_size].set(jnp.asarray(b3, jnp.float32))

    return {
        "w1_t": w1_t, "w2_t": w2_t, "w3_t": w3_t,
        "prm": prm, "gmat_s": gmat_s, "gmat_t": gmat_t,
        "out_size": out_size, "group_size": group_size, "c_pad": c_pad,
    }


# ----------------------------------------------------------------------------
# wrapper
# ----------------------------------------------------------------------------
def decoder_mlp(x, params, *, block_b=512):
    """x: (B, input_size) float32 -> (B, output_size) float32."""
    B, D = x.shape
    c_pad = params["c_pad"]
    out_w = params["w3_t"].shape[1]
    out_size = params["out_size"]

    # pad feature axis to the lane-dense width used by the kernel
    if D != c_pad:
        x = jnp.pad(x, ((0, 0), (0, c_pad - D)))

    # batch tile: big (>=512) for HBM-roofline efficiency, single step at small B
    tb = min(_round_up(block_b, 8), _round_up(B, 8))
    b_pad = _round_up(B, tb)
    if b_pad != B:
        x = jnp.pad(x, ((0, b_pad - B), (0, 0)))
    grid = (b_pad // tb,)

    def resident(shape):
        # full-array block, same block index every grid step -> stays in VMEM
        return pl.BlockSpec(shape, lambda i: (0,) * len(shape))

    weights = (params["w1_t"], params["w2_t"], params["w3_t"], params["prm"],
               params["gmat_s"], params["gmat_t"])

    # only raise the scoped-VMEM limit if the requested tile actually needs it
    est_bytes = 4 * (2 * tb * c_pad + 2 * tb * out_w + sum(w.size for w in weights))
    cp_kwargs = dict(dimension_semantics=("parallel",))
    if est_bytes > 12 * 1024 * 1024:
        cp_kwargs["vmem_limit_bytes"] = min(int(est_bytes * 3 // 2), 60 * 1024 * 1024)

    kernel = partial(decoder_mlp_kernel, group_size=params["group_size"])

    out = pl.pallas_call(
        kernel,
        out_shape=jax.ShapeDtypeStruct((b_pad, out_w), jnp.float32),
        grid=grid,
        in_specs=[pl.BlockSpec((tb, c_pad), lambda i: (i, 0))]
                 + [resident(w.shape) for w in weights],
        out_specs=pl.BlockSpec((tb, out_w), lambda i: (i, 0)),
        compiler_params=pltpu.CompilerParams(**cp_kwargs),
    )(x, *weights)

    return out[:B, :out_size]


# ----------------------------------------------------------------------------
# pure-JAX reference (mirrors the PyTorch forward) for verification
# ----------------------------------------------------------------------------
def decoder_mlp_ref(x, w1, w2, w3, b3, gamma1, beta1, gamma2, beta2, num_groups):
    mm = lambda a, b: jnp.dot(a, b, precision=lax.Precision.HIGHEST)

    def gn(h, gamma, beta):
        B, C = h.shape
        hg = h.reshape(B, num_groups, C // num_groups)
        mean = hg.mean(axis=-1, keepdims=True)
        var = ((hg - mean) ** 2).mean(axis=-1, keepdims=True)
        hn = ((hg - mean) / jnp.sqrt(var + EPS)).reshape(B, C)
        return hn * gamma + beta

    h = mm(x, w1.T)
    h = jnp.maximum(gn(h, gamma1, beta1), 0.0)
    h = mm(h, w2.T)
    h = gn(h, gamma2, beta2)
    h = jnp.maximum(h + x, 0.0)
    return mm(h, w3.T) + b3


if __name__ == "__main__":
    # Residual `out += x` requires input_size == hidden_size (as in the module's use).
    B = 256
    INPUT = HIDDEN = 64
    OUTPUT = 32
    G = gcd(32, HIDDEN)          # = 32 -> group size 2

    key = jax.random.PRNGKey(0)
    ks = jax.random.split(key, 9)
    x = jax.random.normal(ks[0], (B, INPUT), dtype=jnp.float32)

    # PyTorch Linear weights are (out, in).
    w1 = jax.random.normal(ks[1], (HIDDEN, INPUT), jnp.float32) / INPUT ** 0.5
    w2 = jax.random.normal(ks[2], (HIDDEN, HIDDEN), jnp.float32) / HIDDEN ** 0.5
    w3 = jax.random.normal(ks[3], (OUTPUT, HIDDEN), jnp.float32) / HIDDEN ** 0.5
    b3 = 0.1 * jax.random.normal(ks[4], (OUTPUT,), jnp.float32)
    gamma1 = 1.0 + 0.1 * jax.random.normal(ks[5], (HIDDEN,), jnp.float32)
    beta1 = 0.1 * jax.random.normal(ks[6], (HIDDEN,), jnp.float32)
    gamma2 = 1.0 + 0.1 * jax.random.normal(ks[7], (HIDDEN,), jnp.float32)
    beta2 = 0.1 * jax.random.normal(ks[8], (HIDDEN,), jnp.float32)

    params = prepare_params(w1, w2, w3, b3, gamma1, beta1, gamma2, beta2, G)

    out = decoder_mlp(x, params, block_b=512)
    out = jax.block_until_ready(out)

    ref = decoder_mlp_ref(x, w1, w2, w3, b3, gamma1, beta1, gamma2, beta2, G)

    assert out.shape == (B, OUTPUT)
    err = float(jnp.max(jnp.abs(out - ref)))
    assert err < 1e-3, f"max abs err = {err}"

    print("KERNEL_OK")
</pallas_src>

<mosaic_0001>
module attributes {stable_mosaic.version = 11 : i64} {
  func.func @decoder_mlp_kernel(%arg0: i32, %arg1: memref<256x128xf32, #tpu.memory_space<vmem>>, %arg2: memref<128x128xf32, #tpu.memory_space<vmem>>, %arg3: memref<128x128xf32, #tpu.memory_space<vmem>>, %arg4: memref<128x128xf32, #tpu.memory_space<vmem>>, %arg5: memref<8x128xf32, #tpu.memory_space<vmem>>, %arg6: memref<128x32xf32, #tpu.memory_space<vmem>>, %arg7: memref<32x128xf32, #tpu.memory_space<vmem>>, %arg8: memref<256x128xf32, #tpu.memory_space<vmem>>) attributes {dimension_semantics = [#tpu.dimension_semantics<parallel>], iteration_bounds = array<i64: 1>, scalar_prefetch = 0 : i64, scratch_operands = 0 : i64, tpu.core_type = #tpu.core_type<tc>, window_params = [{transform_indices = @transform_0, window_bounds = array<i64: 256, 128>}, {pipeline_mode = #tpu.pipeline_mode<synchronous>, transform_indices = @transform_1, window_bounds = array<i64: 128, 128>}, {pipeline_mode = #tpu.pipeline_mode<synchronous>, transform_indices = @transform_2, window_bounds = array<i64: 128, 128>}, {pipeline_mode = #tpu.pipeline_mode<synchronous>, transform_indices = @transform_3, window_bounds = array<i64: 128, 128>}, {pipeline_mode = #tpu.pipeline_mode<synchronous>, transform_indices = @transform_4, window_bounds = array<i64: 8, 128>}, {pipeline_mode = #tpu.pipeline_mode<synchronous>, transform_indices = @transform_5, window_bounds = array<i64: 128, 32>}, {pipeline_mode = #tpu.pipeline_mode<synchronous>, transform_indices = @transform_6, window_bounds = array<i64: 32, 128>}, {transform_indices = @transform_7, window_bounds = array<i64: 256, 128>}]} {
    %c0 = arith.constant 0 : index
    %c0_0 = arith.constant 0 : index
    %0 = vector.load %arg1[%c0, %c0_0] : memref<256x128xf32, #tpu.memory_space<vmem>>, vector<256x128xf32>
    %c0_1 = arith.constant 0 : index
    %c0_2 = arith.constant 0 : index
    %1 = vector.load %arg6[%c0_1, %c0_2] : memref<128x32xf32, #tpu.memory_space<vmem>>, vector<128x32xf32>
    %c0_3 = arith.constant 0 : index
    %c0_4 = arith.constant 0 : index
    %2 = vector.load %arg7[%c0_3, %c0_4] : memref<32x128xf32, #tpu.memory_space<vmem>>, vector<32x128xf32>
    %c0_5 = arith.constant 0 : index
    %c0_6 = arith.constant 0 : index
    %3 = vector.load %arg5[%c0_5, %c0_6] : memref<8x128xf32, #tpu.memory_space<vmem>>, vector<1x128xf32>
    %c1 = arith.constant 1 : index
    %c0_7 = arith.constant 0 : index
    %4 = vector.load %arg5[%c1, %c0_7] : memref<8x128xf32, #tpu.memory_space<vmem>>, vector<1x128xf32>
    %c2 = arith.constant 2 : index
    %c0_8 = arith.constant 0 : index
    %5 = vector.load %arg5[%c2, %c0_8] : memref<8x128xf32, #tpu.memory_space<vmem>>, vector<1x128xf32>
    %c3 = arith.constant 3 : index
    %c0_9 = arith.constant 0 : index
    %6 = vector.load %arg5[%c3, %c0_9] : memref<8x128xf32, #tpu.memory_space<vmem>>, vector<1x128xf32>
    %c4 = arith.constant 4 : index
    %c0_10 = arith.constant 0 : index
    %7 = vector.load %arg5[%c4, %c0_10] : memref<8x128xf32, #tpu.memory_space<vmem>>, vector<1x128xf32>
    %c0_11 = arith.constant 0 : index
    %c0_12 = arith.constant 0 : index
    %8 = vector.load %arg2[%c0_11, %c0_12] : memref<128x128xf32, #tpu.memory_space<vmem>>, vector<128x128xf32>
    %cst = arith.constant dense<0.000000e+00> : vector<256x128xf32>
    %9 = tpu.matmul %0, %8, %cst {dimension_numbers = #tpu.dot_dimension_numbers<[1], [0], [0], [1], [0, 0, 1, 1], [], []>} : vector<256x128xf32>, vector<128x128xf32>, vector<256x128xf32> -> vector<256x128xf32>
    %cst_13 = arith.constant dense<0.000000e+00> : vector<256x32xf32>
    %10 = tpu.matmul %9, %1, %cst_13 {dimension_numbers = #tpu.dot_dimension_numbers<[1], [0], [0], [1], [0, 0, 1, 1], [], []>} : vector<256x128xf32>, vector<128x32xf32>, vector<256x32xf32> -> vector<256x32xf32>
    %cst_14 = arith.constant dense<0.000000e+00> : vector<256x128xf32>
    %11 = tpu.matmul %10, %2, %cst_14 {dimension_numbers = #tpu.dot_dimension_numbers<[1], [0], [0], [1], [0, 0, 1, 1], [], []>} : vector<256x32xf32>, vector<32x128xf32>, vector<256x128xf32> -> vector<256x128xf32>
    %12 = arith.subf %9, %11 : vector<256x128xf32>
    %13 = arith.mulf %12, %12 : vector<256x128xf32>
    %cst_15 = arith.constant 9.99999974E-6 : f32
    %14 = vector.broadcast %cst_15 : f32 to vector<256x128xf32>
    %15 = arith.addf %13, %14 : vector<256x128xf32>
    %16 = math.rsqrt %15 : vector<256x128xf32>
    %17 = arith.mulf %12, %16 : vector<256x128xf32>
    %18 = vector.broadcast %3 : vector<1x128xf32> to vector<256x128xf32>
    %19 = arith.mulf %17, %18 : vector<256x128xf32>
    %20 = vector.broadcast %4 : vector<1x128xf32> to vector<256x128xf32>
    %21 = arith.addf %19, %20 : vector<256x128xf32>
    %cst_16 = arith.constant 0.000000e+00 : f32
    %22 = vector.broadcast %cst_16 : f32 to vector<256x128xf32>
    %23 = arith.maximumf %21, %22 : vector<256x128xf32>
    %c0_17 = arith.constant 0 : index
    %c0_18 = arith.constant 0 : index
    %24 = vector.load %arg3[%c0_17, %c0_18] : memref<128x128xf32, #tpu.memory_space<vmem>>, vector<128x128xf32>
    %cst_19 = arith.constant dense<0.000000e+00> : vector<256x128xf32>
    %25 = tpu.matmul %23, %24, %cst_19 {dimension_numbers = #tpu.dot_dimension_numbers<[1], [0], [0], [1], [0, 0, 1, 1], [], []>} : vector<256x128xf32>, vector<128x128xf32>, vector<256x128xf32> -> vector<256x128xf32>
    %cst_20 = arith.constant dense<0.000000e+00> : vector<256x32xf32>
    %26 = tpu.matmul %25, %1, %cst_20 {dimension_numbers = #tpu.dot_dimension_numbers<[1], [0], [0], [1], [0, 0, 1, 1], [], []>} : vector<256x128xf32>, vector<128x32xf32>, vector<256x32xf32> -> vector<256x32xf32>
    %cst_21 = arith.constant dense<0.000000e+00> : vector<256x128xf32>
    %27 = tpu.matmul %26, %2, %cst_21 {dimension_numbers = #tpu.dot_dimension_numbers<[1], [0], [0], [1], [0, 0, 1, 1], [], []>} : vector<256x32xf32>, vector<32x128xf32>, vector<256x128xf32> -> vector<256x128xf32>
    %28 = arith.subf %25, %27 : vector<256x128xf32>
    %29 = arith.mulf %28, %28 : vector<256x128xf32>
    %cst_22 = arith.constant 9.99999974E-6 : f32
    %30 = vector.broadcast %cst_22 : f32 to vector<256x128xf32>
    %31 = arith.addf %29, %30 : vector<256x128xf32>
    %32 = math.rsqrt %31 : vector<256x128xf32>
    %33 = arith.mulf %28, %32 : vector<256x128xf32>
    %34 = vector.broadcast %5 : vector<1x128xf32> to vector<256x128xf32>
    %35 = arith.mulf %33, %34 : vector<256x128xf32>
    %36 = vector.broadcast %6 : vector<1x128xf32> to vector<256x128xf32>
    %37 = arith.addf %35, %36 : vector<256x128xf32>
    %38 = arith.addf %37, %0 : vector<256x128xf32>
    %cst_23 = arith.constant 0.000000e+00 : f32
    %39 = vector.broadcast %cst_23 : f32 to vector<256x128xf32>
    %40 = arith.maximumf %38, %39 : vector<256x128xf32>
    %c0_24 = arith.constant 0 : index
    %c0_25 = arith.constant 0 : index
    %41 = vector.load %arg4[%c0_24, %c0_25] : memref<128x128xf32, #tpu.memory_space<vmem>>, vector<128x128xf32>
    %cst_26 = arith.constant dense<0.000000e+00> : vector<256x128xf32>
    %42 = tpu.matmul %40, %41, %cst_26 {dimension_numbers = #tpu.dot_dimension_numbers<[1], [0], [0], [1], [0, 0, 1, 1], [], []>} : vector<256x128xf32>, vector<128x128xf32>, vector<256x128xf32> -> vector<256x128xf32>
    %43 = vector.broadcast %7 : vector<1x128xf32> to vector<256x128xf32>
    %44 = arith.addf %42, %43 : vector<256x128xf32>
    %c0_27 = arith.constant 0 : index
    %c0_28 = arith.constant 0 : index
    %45 = vector.load %arg8[%c0_27, %c0_28] : memref<256x128xf32, #tpu.memory_space<vmem>>, vector<256x128xf32>
    tpu.vector_store %arg8[%c0_27, %c0_28], %44 {strides = array<i32>} : memref<256x128xf32, #tpu.memory_space<vmem>>, vector<256x128xf32>,
    return
  }
  func.func @transform_0(%arg0: i32) -> (i32, i32) {
    %c0_i32 = arith.constant 0 : i32
    %c0_i32_0 = arith.constant 0 : i32
    return %arg0, %c0_i32 : i32, i32
  }
  func.func @transform_1(%arg0: i32) -> (i32, i32) {
    %c0_i32 = arith.constant 0 : i32
    %c0_i32_0 = arith.constant 0 : i32
    %c0_i32_1 = arith.constant 0 : i32
    return %c0_i32, %c0_i32_0 : i32, i32
  }
  func.func @transform_2(%arg0: i32) -> (i32, i32) {
    %c0_i32 = arith.constant 0 : i32
    %c0_i32_0 = arith.constant 0 : i32
    %c0_i32_1 = arith.constant 0 : i32
    return %c0_i32, %c0_i32_0 : i32, i32
  }
  func.func @transform_3(%arg0: i32) -> (i32, i32) {
    %c0_i32 = arith.constant 0 : i32
    %c0_i32_0 = arith.constant 0 : i32
    %c0_i32_1 = arith.constant 0 : i32
    return %c0_i32, %c0_i32_0 : i32, i32
  }
  func.func @transform_4(%arg0: i32) -> (i32, i32) {
    %c0_i32 = arith.constant 0 : i32
    %c0_i32_0 = arith.constant 0 : i32
    %c0_i32_1 = arith.constant 0 : i32
    return %c0_i32, %c0_i32_0 : i32, i32
  }
  func.func @transform_5(%arg0: i32) -> (i32, i32) {
    %c0_i32 = arith.constant 0 : i32
    %c0_i32_0 = arith.constant 0 : i32
    %c0_i32_1 = arith.constant 0 : i32
    return %c0_i32, %c0_i32_0 : i32, i32
  }
  func.func @transform_6(%arg0: i32) -> (i32, i32) {
    %c0_i32 = arith.constant 0 : i32
    %c0_i32_0 = arith.constant 0 : i32
    %c0_i32_1 = arith.constant 0 : i32
    return %c0_i32, %c0_i32_0 : i32, i32
  }
  func.func @transform_7(%arg0: i32) -> (i32, i32) {
    %c0_i32 = arith.constant 0 : i32
    %c0_i32_0 = arith.constant 0 : i32
    return %arg0, %c0_i32 : i32, i32
  }
}

</mosaic_0001>

<bundles_post_ra>
// kernel: tpu_custom_call.1
= control target key start
LH: loop header
LB: loop body
LE: loop exit
PB: predicated region body
PF: predicated region fallthrough
CT: control target
= control target key end

     0   :  { %12 = vsyncpa [#allocation3], 0  ;;  %s4966_s0 = inlined_call_operand.hbm [shape: f32[256,128], index: 0, kind: input, shape index: {}]   ;;  %s4967_s1 = inlined_call_operand.vmem [shape: f32[128,128], index: 1, kind: input, shape index: {}]   ;;  %s4968_s2 = inlined_call_operand.hbm [shape: f32[128,128], index: 2, kind: input, shape index: {}]   ;;  %s4969_s3 = inlined_call_operand.hbm [shape: f32[128,128], index: 3, kind: input, shape index: {}]   ;;  %s4970_s4 = inlined_call_operand.vmem [shape: f32[8,128], index: 4, kind: input, shape index: {}]   ;;  %s4971_s5 = inlined_call_operand.vmem [shape: f32[128,32], index: 5, kind: input, shape index: {}]   ;;  %s4972_s6 = inlined_call_operand.vmem [shape: f32[32,128], index: 6, kind: input, shape index: {}]   ;;  %s4973_s7 = inlined_call_operand.hbm [shape: f32[256,128], index: 7, kind: output, shape index: {}]  }
   0x1   :  { %13 = vsyncpa [#allocation6], 0 }
   0x2   :  { %14 = vsyncpa [#allocation4], 0  ;;  %s3900_s24 = smov [#allocation5]   ;;  %s3901_s26 = smov [#allocation2]  }
   0x3   :  { %s34_s25 = sshll.u32 %s3900_s24, 4  ;;  %s20_s27 = sshll.u32 %s3901_s26, 4  ;;  %s35_s25 = int_to_ptr.vmem [resolvable:$true] %s34_s25  ;;  %s3946_s27 = int_to_ptr.vmem [resolvable:$true] %s20_s27 }
   0x4   :  { %s3806_s30 = scalar_lea.hbm %s4968_s2, 2048 }
   0x5   :  { %p3807_p0 = scmp.ne.s32.totalorder %s4968_s2, %s3806_s30  ;;  %p3810_p1 = scmp.lt.u32.totalorder %s3806_s30, %s4968_s2 }
   0x7   :  { %p3812_p2 = pnand %p3810_p1, %p3807_p0 }
   0x9   :  { %3815 = shalt.err (!%p3812_p2)
}
   0xa   :  { %s3816_s12 = scalar_lea.vmem %s35_s25, 2048  ;;  %p3821_p4 = scmp.lt.s32.totalorder %s35_s25, %s35_s25 }
   0xb   :  { %p3817_p3 = scmp.ne.s32.totalorder %s35_s25, %s3816_s12  ;;  %p3822_p5 = scmp.lt.s32.totalorder %s3816_s12, %s3816_s12 }
   0xd   :  { %p3823_p6 = por %p3822_p5, %p3821_p4 }
   0xf   :  { %p3824_p7 = pnand %p3823_p6, %p3817_p3 }
  0x11   :  { %3827 = shalt.err (!%p3824_p7)
}
  0x12   :  { %s3902_s13 = smov 128   ;;  %s3903_s14 = smov 8  }
  0x13   :  { %40 = dma.hbm_to_vmem [thread:$0]  %s4968_s2, 2048, %s35_s25, [#allocation6], %s3902_s13, %s3902_s13, %s3903_s14  }
  0x14   :  { %s3828_s19 = scalar_lea.hbm %s4966_s0, 4096 }
  0x15   :  { %p3829_p8 = scmp.ne.s32.totalorder %s4966_s0, %s3828_s19  ;;  %p3832_p9 = scmp.lt.u32.totalorder %s3828_s19, %s4966_s0 }
  0x17   :  { %p3834_p10 = pnand %p3832_p9, %p3829_p8 }
  0x19   :  { %3837 = shalt.err (!%p3834_p10)
}
  0x1a   :  { %s3838_s24 = scalar_lea.vmem %s3946_s27, 4096  ;;  %p3843_p12 = scmp.lt.s32.totalorder %s3946_s27, %s3946_s27 }
  0x1b   :  { %p3839_p11 = scmp.ne.s32.totalorder %s3946_s27, %s3838_s24  ;;  %p3844_p13 = scmp.lt.s32.totalorder %s3838_s24, %s3838_s24 }
  0x1d   :  { %p3845_p0 = por %p3844_p13, %p3843_p12 }
  0x1f   :  { %p3846_p1 = pnand %p3845_p0, %p3839_p11 }
  0x21   :  { %3849 = shalt.err (!%p3846_p1)
}
  0x22   :  { %26 = dma.hbm_to_vmem [thread:$0]  %s4966_s0, 4096, %s3946_s27, [#allocation3], %s3902_s13, %s3902_s13, %s3903_s14  }
  0x23   :  { %s3904_s26 = smov [#allocation7]   ;;  %s3850_s8 = scalar_lea.hbm %s4969_s3, 2048 }
  0x24   :  { %s46_s28 = sshll.u32 %s3904_s26, 4  ;;  %p3851_p2 = scmp.ne.s32.totalorder %s4969_s3, %s3850_s8  ;;  %s47_s28 = int_to_ptr.vmem [resolvable:$true] %s46_s28 }
  0x25   :  { %p3854_p3 = scmp.lt.u32.totalorder %s3850_s8, %s4969_s3 }
  0x27   :  { %p3856_p4 = pnand %p3854_p3, %p3851_p2 }
  0x29   :  { %3859 = shalt.err (!%p3856_p4)
}
  0x2a   :  { %s3860_s15 = scalar_lea.vmem %s47_s28, 2048  ;;  %p3865_p6 = scmp.lt.s32.totalorder %s47_s28, %s47_s28 }
  0x2b   :  { %p3861_p5 = scmp.ne.s32.totalorder %s47_s28, %s3860_s15  ;;  %p3866_p7 = scmp.lt.s32.totalorder %s3860_s15, %s3860_s15 }
  0x2d   :  { %p3867_p8 = por %p3866_p7, %p3865_p6 }
  0x2f   :  { %p3868_p9 = pnand %p3867_p8, %p3861_p5 }
  0x31   :  { %3871 = shalt.err (!%p3868_p9)
}
  0x32   :  { %52 = dma.hbm_to_vmem [thread:$0]  %s4969_s3, 2048, %s47_s28, [#allocation6], %s3902_s13, %s3902_s13, %s3903_s14  }
  0x33   :  { %3894 = dma.done.wait [#allocation3], 4096  }
  0x34   :  { %3895 = vsyncadd [#allocation3], 4294963200 }
  0x35   :  { %3896 = dma.done.wait [#allocation6], 4096  }
  0x36   :  { %3897 = vsyncadd [#allocation6], 4294963200  ;;  %v125_v0 = vld [vmem:[%s4967_s1] sm:$0xff]  ;;  %v126_v1 = vld [vmem:[%s4967_s1 + $0x8] sm:$0xff]  ;;  %vm591_vm0 = vcmask 261120  }
  0x37   :  { %v127_v2 = vld [vmem:[%s4967_s1 + $0x10] sm:$0xff]  ;;  %v3448_v3 = vpack.c.bf16 %v126_v1, %v125_v0  ;;  %v128_v4 = vld [vmem:[%s4967_s1 + $0x18] sm:$0xff]  ;;  %v129_v6 = vld [vmem:[%s4967_s1 + $0x20] sm:$0xff] }
  0x38   :  { %v3452_v5 = vpack.c.bf16 %v128_v4, %v127_v2  ;;  %v130_v7 = vld [vmem:[%s4967_s1 + $0x28] sm:$0xff]  ;;  %v68_v9 = vld [vmem:[#allocation2] sm:$0xff]  ;;  %v131_v10 = vld [vmem:[%s4967_s1 + $0x30] sm:$0xff] }
  0x39   :  { %3449 = vmatprep.subr.bf16.mxu0 %v3448_v3  ;;  %3624 = vmatprep.subr.bf16.mxu1 %v3448_v3  ;;  %v3456_v8 = vpack.c.bf16 %v130_v7, %v129_v6  ;;  %v132_v11 = vld [vmem:[%s4967_s1 + $0x38] sm:$0xff]  ;;  %v133_v13 = vld [vmem:[%s4967_s1 + $0x40] sm:$0xff]  ;;  %v134_v14 = vld [vmem:[%s4967_s1 + $0x48] sm:$0xff] }
  0x3a   :  { %3451 = vmatpush3.bf16.msra.mxu0 %v3448_v3  ;;  %3632 = vmatpush3.bf16.msra.mxu1 %v3448_v3  ;;  %v3460_v12 = vpack.c.bf16 %v132_v11, %v131_v10  ;;  %v84_v15 = vld [vmem:[#allocation2 + $0x80] sm:$0xff]  ;;  %v3464_v16 = vpack.c.bf16 %v134_v14, %v133_v13  ;;  %v135_v17 = vld [vmem:[%s4967_s1 + $0x50] sm:$0xff]  ;;  %v136_v18 = vld [vmem:[%s4967_s1 + $0x58] sm:$0xff] }
  0x3b   :  { %3453 = vmatprep.subr.bf16.mxu0 %v3452_v5  ;;  %3625 = vmatprep.subr.bf16.mxu1 %v3452_v5  ;;  %v3468_v19 = vpack.c.bf16 %v136_v18, %v135_v17  ;;  %v137_v20 = vld [vmem:[%s4967_s1 + $0x60] sm:$0xff]  ;;  %v138_v21 = vld [vmem:[%s4967_s1 + $0x68] sm:$0xff]  ;;  %v139_v23 = vld [vmem:[%s4967_s1 + $0x70] sm:$0xff] }
  0x3c   :  { %2968 = vmatprep.mubr.f32.mxu0 %v68_v9  ;;  %2992 = vmatprep.mubr.f32.mxu1 %v84_v15  ;;  %v3472_v22 = vpack.c.bf16 %v138_v21, %v137_v20  ;;  %v140_v24 = vld [vmem:[%s4967_s1 + $0x78] sm:$0xff]  ;;  %v100_v26 = vld [vmem:[%s4971_s5] sm:$0xff]  ;;  %v101_v27 = vld [vmem:[%s4971_s5 + $0x8] sm:$0xff] }
  0x3d   :  { %v3476_v25 = vpack.c.bf16 %v140_v24, %v139_v23  ;;  %v4052_v28 = vpack.c.bf16 %v101_v27, %v100_v26  ;;  %v102_v29 = vld [vmem:[%s4971_s5 + $0x10] sm:$0xff]  ;;  %v103_v30 = vld [vmem:[%s4971_s5 + $0x18] sm:$0xff]  ;;  %v69_v31 = vld [vmem:[#allocation2 + $0x8] sm:$0xff] }
  0x3e   :  { %3455 = vmatpush3.bf16.msra.mxu0 %v3452_v5  ;;  %3633 = vmatpush3.bf16.msra.mxu1 %v3452_v5  ;;  %v85_v32 = vld [vmem:[#allocation2 + $0x88] sm:$0xff]  ;;  %v70_v33 = vld [vmem:[#allocation2 + $0x10] sm:$0xff]  ;;  %v4061_v35 = vpack.c.bf16 %v103_v30, %v102_v29  ;;  %v104_v36 = vld [vmem:[%s4971_s5 + $0x20] sm:$0xff] }
  0x3f   :  { %3457 = vmatprep.subr.bf16.mxu0 %v3456_v8  ;;  %3626 = vmatprep.subr.bf16.mxu1 %v3456_v8  ;;  %v86_v34 = vld [vmem:[#allocation2 + $0x90] sm:$0xff]  ;;  %v105_v37 = vld [vmem:[%s4971_s5 + $0x28] sm:$0xff]  ;;  %v71_v38 = vld [vmem:[#allocation2 + $0x18] sm:$0xff] }
  0x40   :  { %v87_v39 = vld [vmem:[#allocation2 + $0x98] sm:$0xff]  ;;  %v72_v40 = vld [vmem:[#allocation2 + $0x20] sm:$0xff]  ;;  %v4071_v42 = vpack.c.bf16 %v105_v37, %v104_v36  ;;  %v106_v43 = vld [vmem:[%s4971_s5 + $0x30] sm:$0xff] }
  0x41   :  { %v88_v41 = vld [vmem:[#allocation2 + $0xa0] sm:$0xff]  ;;  %v107_v44 = vld [vmem:[%s4971_s5 + $0x38] sm:$0xff]  ;;  %v73_v45 = vld [vmem:[#allocation2 + $0x28] sm:$0xff] }
  0x42   :  { %3459 = vmatpush3.bf16.msra.mxu0 %v3456_v8  ;;  %3634 = vmatpush3.bf16.msra.mxu1 %v3456_v8  ;;  %v89_v46 = vld [vmem:[#allocation2 + $0xa8] sm:$0xff]  ;;  %v74_v47 = vld [vmem:[#allocation2 + $0x30] sm:$0xff]  ;;  %v4081_v49 = vpack.c.bf16 %v107_v44, %v106_v43  ;;  %v108_v50 = vld [vmem:[%s4971_s5 + $0x40] sm:$0xff] }
  0x43   :  { %3461 = vmatprep.subr.bf16.mxu0 %v3460_v12  ;;  %3627 = vmatprep.subr.bf16.mxu1 %v3460_v12  ;;  %v90_v48 = vld [vmem:[#allocation2 + $0xb0] sm:$0xff]  ;;  %v109_v51 = vld [vmem:[%s4971_s5 + $0x48] sm:$0xff]  ;;  %v75_v52 = vld [vmem:[#allocation2 + $0x38] sm:$0xff] }
  0x44   :  { %v91_v53 = vld [vmem:[#allocation2 + $0xb8] sm:$0xff]  ;;  %v76_v54 = vld [vmem:[#allocation2 + $0x40] sm:$0xff]  ;;  %v4091_v56 = vpack.c.bf16 %v109_v51, %v108_v50  ;;  %v110_v57 = vld [vmem:[%s4971_s5 + $0x50] sm:$0xff] }
  0x45   :  { %v92_v55 = vld [vmem:[#allocation2 + $0xc0] sm:$0xff]  ;;  %v111_v58 = vld [vmem:[%s4971_s5 + $0x58] sm:$0xff]  ;;  %v77_v59 = vld [vmem:[#allocation2 + $0x48] sm:$0xff] }
  0x46   :  { %3463 = vmatpush3.bf16.msra.mxu0 %v3460_v12  ;;  %3635 = vmatpush3.bf16.msra.mxu1 %v3460_v12  ;;  %v93_v60 = vld [vmem:[#allocation2 + $0xc8] sm:$0xff]  ;;  %v78_v61 = vld [vmem:[#allocation2 + $0x50] sm:$0xff]  ;;  %v4101_v63 = vpack.c.bf16 %v111_v58, %v110_v57  ;;  %v112_v0 = vld [vmem:[%s4971_s5 + $0x60] sm:$0xff] }
  0x47   :  { %3465 = vmatprep.subr.bf16.mxu0 %v3464_v16  ;;  %3628 = vmatprep.subr.bf16.mxu1 %v3464_v16  ;;  %v94_v62 = vld [vmem:[#allocation2 + $0xd0] sm:$0xff]  ;;  %v113_v1 = vld [vmem:[%s4971_s5 + $0x68] sm:$0xff]  ;;  %v79_v2 = vld [vmem:[#allocation2 + $0x58] sm:$0xff] }
  0x48   :  { %v95_v3 = vld [vmem:[#allocation2 + $0xd8] sm:$0xff]  ;;  %v80_v4 = vld [vmem:[#allocation2 + $0x60] sm:$0xff]  ;;  %v4111_v6 = vpack.c.bf16 %v113_v1, %v112_v0  ;;  %v114_v7 = vld [vmem:[%s4971_s5 + $0x70] sm:$0xff] }
  0x49   :  { %v96_v5 = vld [vmem:[#allocation2 + $0xe0] sm:$0xff]  ;;  %v115_v8 = vld [vmem:[%s4971_s5 + $0x78] sm:$0xff]  ;;  %v81_v9 = vld [vmem:[#allocation2 + $0x68] sm:$0xff] }
  0x4a   :  { %3467 = vmatpush3.bf16.msra.mxu0 %v3464_v16  ;;  %3636 = vmatpush3.bf16.msra.mxu1 %v3464_v16  ;;  %v97_v10 = vld [vmem:[#allocation2 + $0xe8] sm:$0xff]  ;;  %v82_v11 = vld [vmem:[#allocation2 + $0x70] sm:$0xff]  ;;  %v4121_v13 = vpack.c.bf16 %v115_v8, %v114_v7  ;;  %v83_v14 = vld [vmem:[#allocation2 + $0x78] sm:$0xff] }
  0x4b   :  { %3469 = vmatprep.subr.bf16.mxu0 %v3468_v19  ;;  %3629 = vmatprep.subr.bf16.mxu1 %v3468_v19  ;;  %v98_v12 = vld [vmem:[#allocation2 + $0xf0] sm:$0xff]  ;;  %v99_v15 = vld [vmem:[#allocation2 + $0xf8] sm:$0xff]  ;;  %v116_v16 = vld [vmem:[%s4972_s6] sm:$0xff] }
  0x4c   :  { %v117_v17 = vld [vmem:[%s4972_s6 + $0x8] sm:$0xff]  ;;  %v118_v18 = vld [vmem:[%s4972_s6 + $0x10] sm:$0xff]  ;;  %v119_v20 = vld [vmem:[%s4972_s6 + $0x18] sm:$0xff] }
  0x4d   :  { %v4140_v21 = vpack.c.bf16 %v119_v20, %v118_v18  ;;  %v1180_v0 = vld [vmem:[#allocation5 + $0x18] sm:$0xff] }
  0x4e   :  { %3471 = vmatpush3.bf16.msra.mxu0 %v3468_v19  ;;  %3637 = vmatpush3.bf16.msra.mxu1 %v3468_v19  ;;  %v4135_v19 = vpack.c.bf16 %v117_v17, %v116_v16  ;;  %v1184_v7 = vld [vmem:[#allocation5 + $0x38] sm:$0xff] }
  0x4f   :  { %3473 = vmatprep.subr.bf16.mxu0 %v3472_v22  ;;  %3630 = vmatprep.subr.bf16.mxu1 %v3472_v22 }
  0x52   :  { %3475 = vmatpush3.bf16.msra.mxu0 %v3472_v22  ;;  %3638 = vmatpush3.bf16.msra.mxu1 %v3472_v22 }
  0x53   :  { %3477 = vmatprep.subr.bf16.mxu0 %v3476_v25  ;;  %3631 = vmatprep.subr.bf16.mxu1 %v3476_v25 }
  0x56   :  { %3479 = vmatpush3.bf16.msra.mxu0 %v3476_v25  ;;  %3639 = vmatpush3.bf16.msra.mxu1 %v3476_v25 }
  0x57   :  { %3481 = vmatprep.subr.bf16.mxu1 %v4052_v28  ;;  %3513 = vmatprep.subr.bf16.mxu0 %v4135_v19 }
  0x59   :  { %2969 = vmatmul.mubr.f32.vlgmr.msra.gmra.mrb[0].mxu0 %v69_v31  ;;  %2993 = vmatmul.mubr.f32.vlgmr.msra.gmra.mrb[0].mxu1 %v85_v32 }
  0x5a   :  { %2971 = vmatprep.mubr.f32.mxu0 %v70_v33  ;;  %2995 = vmatprep.mubr.f32.mxu1 %v86_v34 }
  0x5b   :  { %3483 = vmatpush3.bf16.msra.mxu1 %v4052_v28  ;;  %3515 = vmatpush3.bf16.msra.mxu0 %v4135_v19 }
  0x5c   :  { %3485 = vmatprep.subr.bf16.mxu1 %v4061_v35  ;;  %3517 = vmatprep.subr.bf16.mxu0 %v4140_v21 }
  0x5d   :  { %2972 = vmatmul.mubr.f32.gmra.mrb[2].mxu0 %v71_v38  ;;  %2996 = vmatmul.mubr.f32.gmra.mrb[2].mxu1 %v87_v39 }
  0x5e   :  { %2974 = vmatprep.mubr.f32.mxu0 %v72_v40  ;;  %2998 = vmatprep.mubr.f32.mxu1 %v88_v41 }
  0x5f   :  { %3487 = vmatpush3.bf16.msra.mxu1 %v4061_v35  ;;  %3519 = vmatpush3.bf16.msra.mxu0 %v4140_v21 }
  0x60   :  { %3489 = vmatprep.subr.bf16.mxu1 %v4071_v42  ;;  %3553 = vmatprep.subr.bf16.mxu0 %v4052_v28 }
  0x61   :  { %2975 = vmatmul.mubr.f32.gmra.mrb[4].mxu0 %v73_v45  ;;  %2999 = vmatmul.mubr.f32.gmra.mrb[4].mxu1 %v89_v46 }
  0x62   :  { %2977 = vmatprep.mubr.f32.mxu0 %v74_v47  ;;  %3001 = vmatprep.mubr.f32.mxu1 %v90_v48 }
  0x63   :  { %3491 = vmatpush3.bf16.msra.mxu1 %v4071_v42 }
  0x64   :  { %3493 = vmatprep.subr.bf16.mxu1 %v4081_v49 }
  0x65   :  { %2978 = vmatmul.mubr.f32.gmra.mrb[6].mxu0 %v75_v52  ;;  %3002 = vmatmul.mubr.f32.gmra.mrb[6].mxu1 %v91_v53 }
  0x66   :  { %2980 = vmatprep.mubr.f32.mxu0 %v76_v54  ;;  %3004 = vmatprep.mubr.f32.mxu1 %v92_v55 }
  0x67   :  { %3495 = vmatpush3.bf16.msra.mxu1 %v4081_v49 }
  0x68   :  { %3497 = vmatprep.subr.bf16.mxu1 %v4091_v56 }
  0x69   :  { %2981 = vmatmul.mubr.f32.gmra.mrb[8].mxu0 %v77_v59  ;;  %3005 = vmatmul.mubr.f32.gmra.mrb[8].mxu1 %v93_v60  ;;  %v1177_v59 = vld [vmem:[#allocation5] sm:$0xff]  ;;  %v1178_v60 = vld [vmem:[#allocation5 + $0x8] sm:$0xff] }
  0x6a   :  { %2983 = vmatprep.mubr.f32.mxu0 %v78_v61  ;;  %3007 = vmatprep.mubr.f32.mxu1 %v94_v62  ;;  %v1179_v61 = vld [vmem:[#allocation5 + $0x10] sm:$0xff]  ;;  %v3520_v62 = vpack.c.bf16 %v1178_v60, %v1177_v59 }
  0x6b   :  { %3499 = vmatpush3.bf16.msra.mxu1 %v4091_v56  ;;  %v3524_v1 = vpack.c.bf16 %v1180_v0, %v1179_v61 }
  0x6c   :  { %3501 = vmatprep.subr.bf16.mxu1 %v4101_v63 }
  0x6d   :  { %2984 = vmatmul.mubr.f32.gmra.mrb[10].mxu0 %v79_v2  ;;  %3008 = vmatmul.mubr.f32.gmra.mrb[10].mxu1 %v95_v3  ;;  %v1181_v2 = vld [vmem:[#allocation5 + $0x20] sm:$0xff]  ;;  %v1182_v3 = vld [vmem:[#allocation5 + $0x28] sm:$0xff] }
  0x6e   :  { %2986 = vmatprep.mubr.f32.mxu0 %v80_v4  ;;  %3010 = vmatprep.mubr.f32.mxu1 %v96_v5  ;;  %v3528_v4 = vpack.c.bf16 %v1182_v3, %v1181_v2  ;;  %v1183_v5 = vld [vmem:[#allocation5 + $0x30] sm:$0xff] }
  0x6f   :  { %3503 = vmatpush3.bf16.msra.mxu1 %v4101_v63  ;;  %v3532_v8 = vpack.c.bf16 %v1184_v7, %v1183_v5 }
  0x70   :  { %3505 = vmatprep.subr.bf16.mxu1 %v4111_v6 }
  0x71   :  { %2987 = vmatmul.mubr.f32.gmra.mrb[12].mxu0 %v81_v9  ;;  %3011 = vmatmul.mubr.f32.gmra.mrb[12].mxu1 %v97_v10  ;;  %v1185_v9 = vld [vmem:[#allocation5 + $0x40] sm:$0xff]  ;;  %v1186_v10 = vld [vmem:[#allocation5 + $0x48] sm:$0xff] }
  0x72   :  { %2989 = vmatprep.mubr.f32.mxu0 %v82_v11  ;;  %3013 = vmatprep.mubr.f32.mxu1 %v98_v12  ;;  %v3536_v11 = vpack.c.bf16 %v1186_v10, %v1185_v9 }
  0x73   :  { %3507 = vmatpush3.bf16.msra.mxu1 %v4111_v6 }
  0x74   :  { %3509 = vmatprep.subr.bf16.mxu1 %v4121_v13 }
  0x75   :  { %2990 = vmatmul.mubr.f32.gmra.mrb[14].mxu0 %v83_v14  ;;  %3014 = vmatmul.mubr.f32.gmra.mrb[14].mxu1 %v99_v15 }
  0x77   :  { %3511 = vmatpush3.bf16.msra.mxu1 %v4121_v13 }
  0x78   :  { %3521 = vmatprep.subr.bf16.mxu1 %v3520_v62 }
 0x12c   :  { %v4147_v22 = vpop.f32.mrb[0].mxu0  ;;  %v4149_v23 = vpop.f32.mrb[0].mxu1 }
 0x12d   :  { %v4151_v24 = vpop.f32.mrb[1].mxu0  ;;  %v4153_v25 = vpop.f32.mrb[1].mxu1 }
 0x12e   :  { %3048 = vmatprep.mubr.f32.mxu1 %v4151_v24 }
 0x12f   :  { %3049 = vmatmul.mubr.f32.vlgmr.msra.gmra.mrb[16].mxu1 %v4147_v22 }
 0x130   :  { %v4157_v26 = vpop.f32.mrb[2].mxu0  ;;  %v4159_v27 = vpop.f32.mrb[2].mxu1  ;;  %3523 = vmatpush3.bf16.msra.mxu1 %v3520_v62 }
 0x131   :  { %v4161_v29 = vpop.f32.mrb[3].mxu0  ;;  %v4163_v30 = vpop.f32.mrb[3].mxu1  ;;  %3525 = vmatprep.subr.bf16.mxu1 %v3524_v1 }
 0x132   :  { %3051 = vmatprep.mubr.f32.mxu1 %v4161_v29 }
 0x133   :  { %3052 = vmatmul.mubr.f32.gmra.mrb[18].mxu1 %v4157_v26 }
 0x134   :  { %v4167_v31 = vpop.f32.mrb[4].mxu0  ;;  %v4169_v32 = vpop.f32.mrb[4].mxu1  ;;  %3527 = vmatpush3.bf16.msra.mxu1 %v3524_v1 }
 0x135   :  { %v4171_v33 = vpop.f32.mrb[5].mxu0  ;;  %v4173_v34 = vpop.f32.mrb[5].mxu1  ;;  %3529 = vmatprep.subr.bf16.mxu1 %v3528_v4 }
 0x136   :  { %3054 = vmatprep.mubr.f32.mxu1 %v4171_v33 }
 0x137   :  { %3055 = vmatmul.mubr.f32.gmra.mrb[20].mxu1 %v4167_v31 }
 0x138   :  { %v4177_v36 = vpop.f32.mrb[6].mxu0  ;;  %v4179_v37 = vpop.f32.mrb[6].mxu1  ;;  %3531 = vmatpush3.bf16.msra.mxu1 %v3528_v4 }
 0x139   :  { %v4181_v38 = vpop.f32.mrb[7].mxu0  ;;  %v4183_v39 = vpop.f32.mrb[7].mxu1  ;;  %3533 = vmatprep.subr.bf16.mxu1 %v3532_v8 }
 0x13a   :  { %3057 = vmatprep.mubr.f32.mxu1 %v4181_v38 }
 0x13b   :  { %3058 = vmatmul.mubr.f32.gmra.mrb[22].mxu1 %v4177_v36 }
 0x13c   :  { %v4187_v40 = vpop.f32.mrb[8].mxu0  ;;  %v4189_v41 = vpop.f32.mrb[8].mxu1  ;;  %3535 = vmatpush3.bf16.msra.mxu1 %v3532_v8 }
 0x13d   :  { %v4191_v43 = vpop.f32.mrb[9].mxu0  ;;  %v4193_v44 = vpop.f32.mrb[9].mxu1  ;;  %3537 = vmatprep.subr.bf16.mxu1 %v3536_v11 }
 0x13e   :  { %3060 = vmatprep.mubr.f32.mxu1 %v4191_v43 }
 0x13f   :  { %3061 = vmatmul.mubr.f32.gmra.mrb[24].mxu1 %v4187_v40 }
 0x140   :  { %v4197_v45 = vpop.f32.mrb[10].mxu0  ;;  %v4199_v46 = vpop.f32.mrb[10].mxu1  ;;  %3539 = vmatpush3.bf16.msra.mxu1 %v3536_v11 }
 0x141   :  { %v4201_v47 = vpop.f32.mrb[11].mxu0  ;;  %v4203_v48 = vpop.f32.mrb[11].mxu1 }
 0x142   :  { %3063 = vmatprep.mubr.f32.mxu1 %v4201_v47 }
 0x143   :  { %3064 = vmatmul.mubr.f32.gmra.mrb[26].mxu1 %v4197_v45 }
 0x144   :  { %v4207_v50 = vpop.f32.mrb[12].mxu0  ;;  %v4209_v51 = vpop.f32.mrb[12].mxu1 }
 0x145   :  { %v4211_v52 = vpop.f32.mrb[13].mxu0  ;;  %v4213_v53 = vpop.f32.mrb[13].mxu1 }
 0x146   :  { %3066 = vmatprep.mubr.f32.mxu1 %v4211_v52 }
 0x147   :  { %3067 = vmatmul.mubr.f32.gmra.mrb[28].mxu1 %v4207_v50 }
 0x148   :  { %v4217_v54 = vpop.f32.mrb[14].mxu0  ;;  %v4219_v55 = vpop.f32.mrb[14].mxu1 }
 0x149   :  { %v4221_v57 = vpop.f32.mrb[15].mxu0  ;;  %v4223_v58 = vpop.f32.mrb[15].mxu1 }
 0x14a   :  { %3069 = vmatprep.mubr.f32.mxu1 %v4221_v57 }
 0x14b   :  { %3070 = vmatmul.mubr.f32.gmra.mrb[30].mxu1 %v4217_v54 }
 0x14c   :  { %3072 = vmatprep.mubr.f32.mxu1 %v4153_v25 }
 0x14f   :  { %3073 = vmatmul.mubr.f32.gmra.mrb[32].mxu1 %v4149_v23 }
 0x150   :  { %3075 = vmatprep.mubr.f32.mxu1 %v4163_v30 }
 0x153   :  { %3076 = vmatmul.mubr.f32.gmra.mrb[34].mxu1 %v4159_v27 }
 0x154   :  { %3078 = vmatprep.mubr.f32.mxu1 %v4173_v34 }
 0x157   :  { %3079 = vmatmul.mubr.f32.gmra.mrb[36].mxu1 %v4169_v32 }
 0x158   :  { %3081 = vmatprep.mubr.f32.mxu1 %v4183_v39 }
 0x15b   :  { %3082 = vmatmul.mubr.f32.gmra.mrb[38].mxu1 %v4179_v37 }
 0x15c   :  { %3084 = vmatprep.mubr.f32.mxu1 %v4193_v44 }
 0x15f   :  { %3085 = vmatmul.mubr.f32.gmra.mrb[40].mxu1 %v4189_v41 }
 0x160   :  { %3087 = vmatprep.mubr.f32.mxu1 %v4203_v48 }
 0x163   :  { %3088 = vmatmul.mubr.f32.gmra.mrb[42].mxu1 %v4199_v46 }
 0x164   :  { %3090 = vmatprep.mubr.f32.mxu1 %v4213_v53 }
 0x167   :  { %3091 = vmatmul.mubr.f32.gmra.mrb[44].mxu1 %v4209_v51 }
 0x168   :  { %3093 = vmatprep.mubr.f32.mxu1 %v4223_v58 }
 0x16b   :  { %3094 = vmatmul.mubr.f32.gmra.mrb[46].mxu1 %v4219_v55 }
 0x202   :  { %v3050_v12 = vpop.f32.mrb[16].mxu1 }
 0x203   :  { %v432_v14 = vpop.f32.mrb[17].mxu1 }
 0x204   :  { %3104 = vmatprep.mubr.msk.f32.mxu0 %vm591_vm0, %v432_v14 }
 0x205   :  { %3105 = vmatmul.mubr.msk.f32.vlgmr.msra.gmra.mrb[16].mxu0 %vm591_vm0, %v3050_v12 }
 0x206   :  { %v3053_v15 = vpop.f32.mrb[18].mxu1  ;;  %3555 = vmatpush3.bf16.msra.mxu0 %v4052_v28 }
 0x207   :  { %v442_v16 = vpop.f32.mrb[19].mxu1  ;;  %3557 = vmatprep.subr.bf16.mxu0 %v4061_v35 }
 0x208   :  { %3107 = vmatprep.mubr.msk.f32.mxu0 %vm591_vm0, %v442_v16  ;;  %v1188_v16 = vld [vmem:[#allocation5 + $0x58] sm:$0xff] }
 0x209   :  { %3108 = vmatmul.mubr.msk.f32.gmra.mrb[18].mxu0 %vm591_vm0, %v3053_v15  ;;  %v1187_v15 = vld [vmem:[#allocation5 + $0x50] sm:$0xff] }
 0x20a   :  { %v3056_v17 = vpop.f32.mrb[20].mxu1  ;;  %3559 = vmatpush3.bf16.msra.mxu0 %v4061_v35 }
 0x20b   :  { %v452_v18 = vpop.f32.mrb[21].mxu1  ;;  %3561 = vmatprep.subr.bf16.mxu0 %v4071_v42 }
 0x20c   :  { %3110 = vmatprep.mubr.msk.f32.mxu0 %vm591_vm0, %v452_v18  ;;  %v1189_v18 = vld [vmem:[#allocation5 + $0x60] sm:$0xff] }
 0x20d   :  { %3111 = vmatmul.mubr.msk.f32.gmra.mrb[20].mxu0 %vm591_vm0, %v3056_v17  ;;  %v3540_v17 = vpack.c.bf16 %v1188_v16, %v1187_v15 }
 0x20e   :  { %v3059_v20 = vpop.f32.mrb[22].mxu1  ;;  %3563 = vmatpush3.bf16.msra.mxu0 %v4071_v42 }
 0x20f   :  { %v462_v28 = vpop.f32.mrb[23].mxu1  ;;  %3565 = vmatprep.subr.bf16.mxu0 %v4081_v49  ;;  %3541 = vmatprep.subr.bf16.mxu1 %v3540_v17 }
 0x210   :  { %3113 = vmatprep.mubr.msk.f32.mxu0 %vm591_vm0, %v462_v28  ;;  %3543 = vmatpush3.bf16.msra.mxu1 %v3540_v17 }
 0x211   :  { %3114 = vmatmul.mubr.msk.f32.gmra.mrb[22].mxu0 %vm591_vm0, %v3059_v20  ;;  %v1190_v20 = vld [vmem:[#allocation5 + $0x68] sm:$0xff] }
 0x212   :  { %v3062_v59 = vpop.f32.mrb[24].mxu1  ;;  %3567 = vmatpush3.bf16.msra.mxu0 %v4081_v49  ;;  %v3544_v28 = vpack.c.bf16 %v1190_v20, %v1189_v18 }
 0x213   :  { %v472_v35 = vpop.f32.mrb[25].mxu1  ;;  %3569 = vmatprep.subr.bf16.mxu0 %v4091_v56 }
 0x214   :  { %3116 = vmatprep.mubr.msk.f32.mxu0 %vm591_vm0, %v472_v35  ;;  %3545 = vmatprep.subr.bf16.mxu1 %v3544_v28  ;;  %v1192_v35 = vld [vmem:[#allocation5 + $0x78] sm:$0xff] }
 0x215   :  { %3117 = vmatmul.mubr.msk.f32.gmra.mrb[24].mxu0 %vm591_vm0, %v3062_v59  ;;  %3547 = vmatpush3.bf16.msra.mxu1 %v3544_v28  ;;  %v1191_v59 = vld [vmem:[#allocation5 + $0x70] sm:$0xff] }
 0x216   :  { %v3065_v60 = vpop.f32.mrb[26].mxu1  ;;  %3571 = vmatpush3.bf16.msra.mxu0 %v4091_v56 }
 0x217   :  { %v482_v42 = vpop.f32.mrb[27].mxu1  ;;  %3573 = vmatprep.subr.bf16.mxu0 %v4101_v63 }
 0x218   :  { %3119 = vmatprep.mubr.msk.f32.mxu0 %vm591_vm0, %v482_v42 }
 0x219   :  { %3120 = vmatmul.mubr.msk.f32.gmra.mrb[26].mxu0 %vm591_vm0, %v3065_v60  ;;  %v3548_v60 = vpack.c.bf16 %v1192_v35, %v1191_v59 }
 0x21a   :  { %v3068_v61 = vpop.f32.mrb[28].mxu1  ;;  %3575 = vmatpush3.bf16.msra.mxu0 %v4101_v63 }
 0x21b   :  { %v492_v49 = vpop.f32.mrb[29].mxu1  ;;  %3577 = vmatprep.subr.bf16.mxu0 %v4111_v6  ;;  %3549 = vmatprep.subr.bf16.mxu1 %v3548_v60 }
 0x21c   :  { %3122 = vmatprep.mubr.msk.f32.mxu0 %vm591_vm0, %v492_v49  ;;  %3551 = vmatpush3.bf16.msra.mxu1 %v3548_v60 }
 0x21d   :  { %3123 = vmatmul.mubr.msk.f32.gmra.mrb[28].mxu0 %vm591_vm0, %v3068_v61  ;;  %3585 = vmatprep.subr.bf16.mxu1 %v4135_v19 }
 0x21e   :  { %v3071_v62 = vpop.f32.mrb[30].mxu1  ;;  %3579 = vmatpush3.bf16.msra.mxu0 %v4111_v6 }
 0x21f   :  { %v502_v56 = vpop.f32.mrb[31].mxu1  ;;  %3581 = vmatprep.subr.bf16.mxu0 %v4121_v13 }
 0x220   :  { %3125 = vmatprep.mubr.msk.f32.mxu0 %vm591_vm0, %v502_v56 }
 0x221   :  { %3126 = vmatmul.mubr.msk.f32.gmra.mrb[30].mxu0 %vm591_vm0, %v3071_v62 }
 0x222   :  { %v3074_v0 = vpop.f32.mrb[32].mxu1  ;;  %3583 = vmatpush3.bf16.msra.mxu0 %v4121_v13 }
 0x223   :  { %v512_v63 = vpop.f32.mrb[33].mxu1 }
 0x224   :  { %3128 = vmatprep.mubr.msk.f32.mxu0 %vm591_vm0, %v512_v63 }
 0x225   :  { %3129 = vmatmul.mubr.msk.f32.gmra.mrb[32].mxu0 %vm591_vm0, %v3074_v0 }
 0x226   :  { %v3077_v1 = vpop.f32.mrb[34].mxu1 }
 0x227   :  { %v522_v2 = vpop.f32.mrb[35].mxu1 }
 0x228   :  { %3131 = vmatprep.mubr.msk.f32.mxu0 %vm591_vm0, %v522_v2 }
 0x229   :  { %3132 = vmatmul.mubr.msk.f32.gmra.mrb[34].mxu0 %vm591_vm0, %v3077_v1 }
 0x22a   :  { %v3080_v6 = vpop.f32.mrb[36].mxu1 }
 0x22b   :  { %v532_v3 = vpop.f32.mrb[37].mxu1 }
 0x22c   :  { %3134 = vmatprep.mubr.msk.f32.mxu0 %vm591_vm0, %v532_v3 }
 0x22d   :  { %3135 = vmatmul.mubr.msk.f32.gmra.mrb[36].mxu0 %vm591_vm0, %v3080_v6 }
 0x22e   :  { %v3083_v4 = vpop.f32.mrb[38].mxu1 }
 0x22f   :  { %v542_v5 = vpop.f32.mrb[39].mxu1 }
 0x230   :  { %3137 = vmatprep.mubr.msk.f32.mxu0 %vm591_vm0, %v542_v5 }
 0x231   :  { %3138 = vmatmul.mubr.msk.f32.gmra.mrb[38].mxu0 %vm591_vm0, %v3083_v4 }
 0x232   :  { %v3086_v13 = vpop.f32.mrb[40].mxu1 }
 0x233   :  { %v552_v7 = vpop.f32.mrb[41].mxu1 }
 0x234   :  { %3140 = vmatprep.mubr.msk.f32.mxu0 %vm591_vm0, %v552_v7 }
 0x235   :  { %3141 = vmatmul.mubr.msk.f32.gmra.mrb[40].mxu0 %vm591_vm0, %v3086_v13 }
 0x236   :  { %v3089_v8 = vpop.f32.mrb[42].mxu1 }
 0x237   :  { %v562_v9 = vpop.f32.mrb[43].mxu1 }
 0x238   :  { %3143 = vmatprep.mubr.msk.f32.mxu0 %vm591_vm0, %v562_v9 }
 0x239   :  { %3144 = vmatmul.mubr.msk.f32.gmra.mrb[42].mxu0 %vm591_vm0, %v3089_v8 }
 0x23a   :  { %v3092_v10 = vpop.f32.mrb[44].mxu1 }
 0x23b   :  { %v572_v11 = vpop.f32.mrb[45].mxu1 }
 0x23c   :  { %3146 = vmatprep.mubr.msk.f32.mxu0 %vm591_vm0, %v572_v11 }
 0x23d   :  { %3147 = vmatmul.mubr.msk.f32.gmra.mrb[44].mxu0 %vm591_vm0, %v3092_v10 }
 0x23e   :  { %v3095_v12 = vpop.f32.mrb[46].mxu1 }
 0x23f   :  { %v582_v14 = vpop.f32.mrb[47].mxu1 }
 0x240   :  { %3149 = vmatprep.mubr.msk.f32.mxu0 %vm591_vm0, %v582_v14 }
 0x241   :  { %3150 = vmatmul.mubr.msk.f32.gmra.mrb[46].mxu0 %vm591_vm0, %v3095_v12 }
 0x2d8   :  { %v3106_v42 = vpop.f32.mrb[16].mxu0 }
 0x2d9   :  { %v914_v61 = vsub.f32 %v4147_v22, %v3106_v42  ;;  %v754_v49 = vpop.f32.mrb[17].mxu0 }
 0x2da   :  { %v913_v62 = vsub.f32 %v4151_v24, %v754_v49 }
 0x2db   :  { %v946_v56 = vmul.f32 %v914_v61, %v914_v61 }
 0x2dc   :  { %v945_v0 = vmul.f32 %v913_v62, %v913_v62  ;;  %v3109_v63 = vpop.f32.mrb[18].mxu0 }
 0x2dd   :  { %v978_v1 = vadd.f32 1e-05, %v946_v56  ;;  %v916_v2 = vsub.f32 %v4157_v26, %v3109_v63  ;;  %v764_v6 = vpop.f32.mrb[19].mxu0  ;;  %v4325_v56 = vld [vmem:[%s4970_s4 + $0x1] ss:$0 sm:$0xff] }
 0x2de   :  { %v977_v3 = vadd.f32 1e-05, %v945_v0  ;;  %v915_v4 = vsub.f32 %v4161_v29, %v764_v6 }
 0x2df   :  { %3646 = vrsqrt.f32 %v978_v1  ;;  %v948_v5 = vmul.f32 %v916_v2, %v916_v2 }
 0x2e0   :  { %3648 = vrsqrt.f32 %v977_v3  ;;  %v947_v13 = vmul.f32 %v915_v4, %v915_v4  ;;  %v3112_v7 = vpop.f32.mrb[20].mxu0 }
 0x2e1   :  { %v980_v8 = vadd.f32 1e-05, %v948_v5  ;;  %v918_v22 = vsub.f32 %v4167_v31, %v3112_v7  ;;  %v774_v9 = vpop.f32.mrb[21].mxu0 }
 0x2e2   :  { %v979_v24 = vadd.f32 1e-05, %v947_v13  ;;  %v4297_v10 = vsub.f32 %v4171_v33, %v774_v9 }
 0x2e3   :  { %3650 = vrsqrt.f32 %v980_v8  ;;  %v950_v11 = vmul.f32 %v918_v22, %v918_v22 }
 0x2e4   :  { %3652 = vrsqrt.f32 %v979_v24  ;;  %v949_v26 = vmul.f32 %v4297_v10, %v4297_v10  ;;  %v3115_v29 = vpop.f32.mrb[22].mxu0 }
 0x2e5   :  { %v982_v12 = vadd.f32 1e-05, %v950_v11  ;;  %v4302_v14 = vsub.f32 %v4177_v36, %v3115_v29  ;;  %v784_v15 = vpop.f32.mrb[23].mxu0  ;;  %v4314_v36 = vld [vmem:[%s4970_s4] ss:$0 sm:$0xff] }
 0x2e6   :  { %v981_v16 = vadd.f32 1e-05, %v949_v26  ;;  %v4305_v31 = vsub.f32 %v4181_v38, %v784_v15 }
 0x2e7   :  { %3654 = vrsqrt.f32 %v982_v12  ;;  %v952_v33 = vmul.f32 %v4302_v14, %v4302_v14 }
 0x2e8   :  { %3656 = vrsqrt.f32 %v981_v16  ;;  %v951_v17 = vmul.f32 %v4305_v31, %v4305_v31  ;;  %v3118_v18 = vpop.f32.mrb[24].mxu0 }
 0x2e9   :  { %v3647_v20 = vpop.eup %3646  ;;  %v984_v28 = vadd.f32 1e-05, %v952_v33  ;;  %v4317_v59 = vsub.f32 %v4187_v40, %v3118_v18  ;;  %v794_v38 = vpop.f32.mrb[25].mxu0 }
 0x2ea   :  { %v3649_v35 = vpop.eup %3648  ;;  %v1042_v60 = vmul.f32 %v3647_v20, %v914_v61  ;;  %v983_v42 = vadd.f32 1e-05, %v951_v17  ;;  %v4320_v49 = vsub.f32 %v4191_v43, %v794_v38 }
 0x2eb   :  { %v1041_v0 = vmul.f32 %v3649_v35, %v913_v62  ;;  %3658 = vrsqrt.f32 %v984_v28  ;;  %v954_v63 = vmul.f32 %v4317_v59, %v4317_v59 }
 0x2ec   :  { %v1078_v40 = vmul.f32 %v4314_v36, %v1042_v60  ;;  %3660 = vrsqrt.f32 %v983_v42  ;;  %v953_v61 = vmul.f32 %v4320_v49, %v4320_v49  ;;  %v3121_v1 = vpop.f32.mrb[26].mxu0 }
 0x2ed   :  { %v3651_v6 = vpop.eup %3650  ;;  %v1077_v43 = vmul.f32 %v4314_v36, %v1041_v0  ;;  %v986_v3 = vadd.f32 1e-05, %v954_v63  ;;  %v4334_v5 = vsub.f32 %v4197_v45, %v3121_v1  ;;  %v804_v13 = vpop.f32.mrb[27].mxu0 }
 0x2ee   :  { %v3653_v62 = vpop.eup %3652  ;;  %v1114_v7 = vadd.f32 %v4325_v56, %v1078_v40  ;;  %v1044_v8 = vmul.f32 %v3651_v6, %v916_v2  ;;  %v985_v9 = vadd.f32 1e-05, %v953_v61  ;;  %v4338_v24 = vsub.f32 %v4201_v47, %v804_v13 }
 0x2ef   :  { %v1043_v11 = vmul.f32 %v3653_v62, %v915_v4  ;;  %3662 = vrsqrt.f32 %v986_v3  ;;  %v956_v26 = vmul.f32 %v4334_v5, %v4334_v5  ;;  %v1113_v29 = vadd.f32 %v4325_v56, %v1077_v43 }
 0x2f0   :  { %v1146_v12 = vmax.f32 %v1114_v7, 0.0  ;;  %v1080_v45 = vmul.f32 %v4314_v36, %v1044_v8  ;;  %3664 = vrsqrt.f32 %v985_v9  ;;  %v955_v15 = vmul.f32 %v4338_v24, %v4338_v24  ;;  %v3124_v16 = vpop.f32.mrb[28].mxu0 }
 0x2f1   :  { %v3655_v2 = vpop.eup %3654  ;;  %v1079_v33 = vmul.f32 %v4314_v36, %v1043_v11  ;;  %v988_v47 = vadd.f32 1e-05, %v956_v26  ;;  %v4348_v4 = vsub.f32 %v4207_v50, %v3124_v16  ;;  %v814_v17 = vpop.f32.mrb[29].mxu0  ;;  %v1145_v18 = vmax.f32 %v1113_v29, 0.0 }
 0x2f2   :  { %v3657_v20 = vpop.eup %3656  ;;  %v1046_v28 = vmul.f32 %v3655_v2, %v918_v22  ;;  %v987_v38 = vadd.f32 1e-05, %v955_v15  ;;  %v4351_v35 = vsub.f32 %v4211_v52, %v814_v17  ;;  %v1116_v60 = vadd.f32 %v4325_v56, %v1080_v45 }
 0x2f3   :  { %v1045_v42 = vmul.f32 %v3657_v20, %v4297_v10  ;;  %3666 = vrsqrt.f32 %v988_v47  ;;  %v958_v0 = vmul.f32 %v4348_v4, %v4348_v4  ;;  %3184 = vmatprep.mubr.f32.mxu1 %v1145_v18  ;;  %v1115_v50 = vadd.f32 %v4325_v56, %v1079_v33 }
 0x2f4   :  { %v1082_v63 = vmul.f32 %v4314_v36, %v1046_v28  ;;  %3668 = vrsqrt.f32 %v987_v38  ;;  %v957_v22 = vmul.f32 %v4351_v35, %v4351_v35  ;;  %v3127_v40 = vpop.f32.mrb[30].mxu0  ;;  %3185 = vmatmul.mubr.f32.vlgmr.msra.gmra.mrb[48].mxu1 %v1146_v12  ;;  %v1148_v52 = vmax.f32 %v1116_v60, 0.0 }
 0x2f5   :  { %v3659_v61 = vpop.eup %3658  ;;  %v1081_v1 = vmul.f32 %v4314_v36, %v1045_v42  ;;  %v990_v10 = vadd.f32 1e-05, %v958_v0  ;;  %v4363_v6 = vsub.f32 %v4217_v54, %v3127_v40  ;;  %v824_v43 = vpop.f32.mrb[31].mxu0  ;;  %v1147_v3 = vmax.f32 %v1115_v50, 0.0  ;;  %3587 = vmatpush3.bf16.msra.mxu1 %v4135_v19 }
 0x2f6   :  { %v3661_v13 = vpop.eup %3660  ;;  %v1048_v62 = vmul.f32 %v3659_v61, %v4302_v14  ;;  %v989_v7 = vadd.f32 1e-05, %v957_v22  ;;  %v4368_v8 = vsub.f32 %v4221_v57, %v824_v43  ;;  %v1118_v9 = vadd.f32 %v4325_v56, %v1082_v63  ;;  %3589 = vmatprep.subr.bf16.mxu1 %v4140_v21 }
 0x2f7   :  { %v1047_v11 = vmul.f32 %v3661_v13, %v4305_v31  ;;  %3670 = vrsqrt.f32 %v990_v10  ;;  %v960_v54 = vmul.f32 %v4363_v6, %v4363_v6  ;;  %3187 = vmatprep.mubr.f32.mxu1 %v1147_v3  ;;  %v1117_v19 = vadd.f32 %v4325_v56, %v1081_v1 }
 0x2f8   :  { %v1084_v26 = vmul.f32 %v4314_v36, %v1048_v62  ;;  %3672 = vrsqrt.f32 %v989_v7  ;;  %v959_v57 = vmul.f32 %v4368_v8, %v4368_v8  ;;  %v3130_v14 = vpop.f32.mrb[32].mxu0  ;;  %3188 = vmatmul.mubr.f32.gmra.mrb[50].mxu1 %v1148_v52  ;;  %v1150_v29 = vmax.f32 %v1118_v9, 0.0 }
 0x2f9   :  { %v3663_v12 = vpop.eup %3662  ;;  %v1083_v45 = vmul.f32 %v4314_v36, %v1047_v11  ;;  %v992_v31 = vadd.f32 1e-05, %v960_v54  ;;  %v4381_v15 = vsub.f32 %v4149_v23, %v3130_v14  ;;  %v834_v16 = vpop.f32.mrb[33].mxu0  ;;  %v1149_v2 = vmax.f32 %v1117_v19, 0.0  ;;  %3591 = vmatpush3.bf16.msra.mxu1 %v4140_v21 }
 0x2fa   :  { %v3665_v33 = vpop.eup %3664  ;;  %v1050_v47 = vmul.f32 %v3663_v12, %v4317_v59  ;;  %v991_v17 = vadd.f32 1e-05, %v959_v57  ;;  %v4386_v18 = vsub.f32 %v4153_v25, %v834_v16  ;;  %v1120_v20 = vadd.f32 %v4325_v56, %v1084_v26 }
 0x2fb   :  { %v1049_v28 = vmul.f32 %v3665_v33, %v4320_v49  ;;  %3674 = vrsqrt.f32 %v992_v31  ;;  %v962_v23 = vmul.f32 %v4381_v15, %v4381_v15  ;;  %3190 = vmatprep.mubr.f32.mxu1 %v1149_v2  ;;  %v1119_v38 = vadd.f32 %v4325_v56, %v1083_v45 }
 0x2fc   :  { %v1086_v21 = vmul.f32 %v4314_v36, %v1050_v47  ;;  %3676 = vrsqrt.f32 %v991_v17  ;;  %v961_v59 = vmul.f32 %v4386_v18, %v4386_v18  ;;  %v3133_v60 = vpop.f32.mrb[34].mxu0  ;;  %3191 = vmatmul.mubr.f32.gmra.mrb[52].mxu1 %v1150_v29  ;;  %v1152_v25 = vmax.f32 %v1120_v20, 0.0 }
 0x2fd   :  { %v3667_v42 = vpop.eup %3666  ;;  %v1085_v0 = vmul.f32 %v4314_v36, %v1049_v28  ;;  %v994_v49 = vadd.f32 1e-05, %v962_v23  ;;  %v4398_v50 = vsub.f32 %v4159_v27, %v3133_v60  ;;  %v844_v63 = vpop.f32.mrb[35].mxu0  ;;  %v1151_v22 = vmax.f32 %v1119_v38, 0.0 }
 0x2fe   :  { %v3669_v40 = vpop.eup %3668  ;;  %v1052_v52 = vmul.f32 %v3667_v42, %v4334_v5  ;;  %v993_v61 = vadd.f32 1e-05, %v961_v59  ;;  %v4402_v1 = vsub.f32 %v4163_v30, %v844_v63  ;;  %v1122_v10 = vadd.f32 %v4325_v56, %v1086_v21 }
 0x2ff   :  { %v1051_v43 = vmul.f32 %v3669_v40, %v4338_v24  ;;  %3678 = vrsqrt.f32 %v994_v49  ;;  %v964_v3 = vmul.f32 %v4398_v50, %v4398_v50  ;;  %3193 = vmatprep.mubr.f32.mxu1 %v1151_v22  ;;  %v1121_v27 = vadd.f32 %v4325_v56, %v1085_v0 }
 0x300   :  { %v1088_v13 = vmul.f32 %v4314_v36, %v1052_v52  ;;  %3680 = vrsqrt.f32 %v993_v61  ;;  %v963_v5 = vmul.f32 %v4402_v1, %v4402_v1  ;;  %v3136_v62 = vpop.f32.mrb[36].mxu0  ;;  %3194 = vmatmul.mubr.f32.gmra.mrb[54].mxu1 %v1152_v25  ;;  %v1154_v30 = vmax.f32 %v1122_v10, 0.0 }
 0x301   :  { %v3671_v7 = vpop.eup %3670  ;;  %v1087_v9 = vmul.f32 %v4314_v36, %v1051_v43  ;;  %v996_v24 = vadd.f32 1e-05, %v964_v3  ;;  %v4414_v11 = vsub.f32 %v4169_v32, %v3136_v62  ;;  %v854_v54 = vpop.f32.mrb[37].mxu0  ;;  %v1153_v19 = vmax.f32 %v1121_v27, 0.0 }
 0x302   :  { %v3673_v26 = vpop.eup %3672  ;;  %v1054_v57 = vmul.f32 %v3671_v7, %v4348_v4  ;;  %v995_v14 = vadd.f32 1e-05, %v963_v5  ;;  %v4418_v29 = vsub.f32 %v4173_v34, %v854_v54  ;;  %v1124_v12 = vadd.f32 %v4325_v56, %v1088_v13 }
 0x303   :  { %v1053_v45 = vmul.f32 %v3673_v26, %v4351_v35  ;;  %3682 = vrsqrt.f32 %v996_v24  ;;  %v966_v31 = vmul.f32 %v4414_v11, %v4414_v11  ;;  %3196 = vmatprep.mubr.f32.mxu1 %v1153_v19  ;;  %v1123_v32 = vadd.f32 %v4325_v56, %v1087_v9 }
 0x304   :  { %v1090_v16 = vmul.f32 %v4314_v36, %v1054_v57  ;;  %3684 = vrsqrt.f32 %v995_v14  ;;  %v965_v4 = vmul.f32 %v4418_v29, %v4418_v29  ;;  %v3139_v2 = vpop.f32.mrb[38].mxu0  ;;  %3197 = vmatmul.mubr.f32.gmra.mrb[56].mxu1 %v1154_v30  ;;  %v1156_v34 = vmax.f32 %v1124_v12, 0.0 }
 0x305   :  { %v3675_v33 = vpop.eup %3674  ;;  %v1089_v47 = vmul.f32 %v4314_v36, %v1053_v45  ;;  %v998_v35 = vadd.f32 1e-05, %v966_v31  ;;  %v4430_v17 = vsub.f32 %v4179_v37, %v3139_v2  ;;  %v864_v20 = vpop.f32.mrb[39].mxu0  ;;  %v1155_v28 = vmax.f32 %v1123_v32, 0.0 }
 0x306   :  { %v3677_v23 = vpop.eup %3676  ;;  %v1056_v38 = vmul.f32 %v3675_v33, %v4363_v6  ;;  %v997_v21 = vadd.f32 1e-05, %v965_v4  ;;  %v4434_v59 = vsub.f32 %v4183_v39, %v864_v20  ;;  %v1126_v60 = vadd.f32 %v4325_v56, %v1090_v16 }
 0x307   :  { %v1055_v25 = vmul.f32 %v3677_v23, %v4368_v8  ;;  %3686 = vrsqrt.f32 %v998_v35  ;;  %v968_v42 = vmul.f32 %v4430_v17, %v4430_v17  ;;  %3199 = vmatprep.mubr.f32.mxu1 %v1155_v28  ;;  %v1125_v37 = vadd.f32 %v4325_v56, %v1089_v47 }
 0x308   :  { %v1092_v0 = vmul.f32 %v4314_v36, %v1056_v38  ;;  %3688 = vrsqrt.f32 %v997_v21  ;;  %v967_v6 = vmul.f32 %v4434_v59, %v4434_v59  ;;  %v3142_v49 = vpop.f32.mrb[40].mxu0  ;;  %3200 = vmatmul.mubr.f32.gmra.mrb[58].mxu1 %v1156_v34  ;;  %v1158_v39 = vmax.f32 %v1126_v60, 0.0 }
 0x309   :  { %v3679_v63 = vpop.eup %3678  ;;  %v1091_v22 = vmul.f32 %v4314_v36, %v1055_v25  ;;  %v1000_v8 = vadd.f32 1e-05, %v968_v42  ;;  %v4446_v40 = vsub.f32 %v4189_v41, %v3142_v49  ;;  %v874_v52 = vpop.f32.mrb[41].mxu0  ;;  %v1157_v61 = vmax.f32 %v1125_v37, 0.0 }
 0x30a   :  { %v3681_v10 = vpop.eup %3680  ;;  %v1058_v43 = vmul.f32 %v3679_v63, %v4381_v15  ;;  %v999_v3 = vadd.f32 1e-05, %v967_v6  ;;  %v4450_v27 = vsub.f32 %v4193_v44, %v874_v52  ;;  %v1128_v13 = vadd.f32 %v4325_v56, %v1092_v0 }
 0x30b   :  { %v1057_v5 = vmul.f32 %v3681_v10, %v4386_v18  ;;  %3690 = vrsqrt.f32 %v1000_v8  ;;  %v970_v62 = vmul.f32 %v4446_v40, %v4446_v40  ;;  %3202 = vmatprep.mubr.f32.mxu1 %v1157_v61  ;;  %v1127_v41 = vadd.f32 %v4325_v56, %v1091_v22 }
 0x30c   :  { %v1094_v30 = vmul.f32 %v4314_v36, %v1058_v43  ;;  %3692 = vrsqrt.f32 %v999_v3  ;;  %v969_v15 = vmul.f32 %v4450_v27, %v4450_v27  ;;  %v3145_v7 = vpop.f32.mrb[42].mxu0  ;;  %3203 = vmatmul.mubr.f32.gmra.mrb[60].mxu1 %v1158_v39  ;;  %v1160_v44 = vmax.f32 %v1128_v13, 0.0 }
 0x30d   :  { %v3683_v9 = vpop.eup %3682  ;;  %v1093_v24 = vmul.f32 %v4314_v36, %v1057_v5  ;;  %v1002_v18 = vadd.f32 1e-05, %v970_v62  ;;  %v4462_v54 = vsub.f32 %v4199_v46, %v3145_v7  ;;  %v884_v19 = vpop.f32.mrb[43].mxu0  ;;  %v1159_v26 = vmax.f32 %v1127_v41, 0.0 }
 0x30e   :  { %v3685_v57 = vpop.eup %3684  ;;  %v1060_v14 = vmul.f32 %v3683_v9, %v4398_v50  ;;  %v1001_v12 = vadd.f32 1e-05, %v969_v15  ;;  %v4466_v45 = vsub.f32 %v4203_v48, %v884_v19  ;;  %v1130_v31 = vadd.f32 %v4325_v56, %v1094_v30 }
 0x30f   :  { %v1059_v32 = vmul.f32 %v3685_v57, %v4402_v1  ;;  %3694 = vrsqrt.f32 %v1002_v18  ;;  %v972_v16 = vmul.f32 %v4462_v54, %v4462_v54  ;;  %3205 = vmatprep.mubr.f32.mxu1 %v1159_v26  ;;  %v1129_v46 = vadd.f32 %v4325_v56, %v1093_v24 }
 0x310   :  { %v1096_v4 = vmul.f32 %v4314_v36, %v1060_v14  ;;  %3696 = vrsqrt.f32 %v1001_v12  ;;  %v971_v50 = vmul.f32 %v4466_v45, %v4466_v45  ;;  %v3148_v2 = vpop.f32.mrb[44].mxu0  ;;  %3206 = vmatmul.mubr.f32.gmra.mrb[62].mxu1 %v1160_v44  ;;  %v1162_v48 = vmax.f32 %v1130_v31, 0.0 }
 0x311   :  { %v3687_v34 = vpop.eup %3686  ;;  %v1095_v33 = vmul.f32 %v4314_v36, %v1059_v32  ;;  %v1004_v1 = vadd.f32 1e-05, %v972_v16  ;;  %v4478_v47 = vsub.f32 %v4209_v51, %v3148_v2  ;;  %v894_v35 = vpop.f32.mrb[45].mxu0  ;;  %v1161_v20 = vmax.f32 %v1129_v46, 0.0 }
 0x312   :  { %v3689_v28 = vpop.eup %3688  ;;  %v1062_v23 = vmul.f32 %v3687_v34, %v4414_v11  ;;  %v1003_v38 = vadd.f32 1e-05, %v971_v50  ;;  %v4482_v21 = vsub.f32 %v4213_v53, %v894_v35  ;;  %v1132_v60 = vadd.f32 %v4325_v56, %v1096_v4 }
 0x313   :  { %v1061_v25 = vmul.f32 %v3689_v28, %v4418_v29  ;;  %3698 = vrsqrt.f32 %v1004_v1  ;;  %v974_v42 = vmul.f32 %v4478_v47, %v4478_v47  ;;  %3208 = vmatprep.mubr.f32.mxu1 %v1161_v20  ;;  %v1131_v51 = vadd.f32 %v4325_v56, %v1095_v33 }
 0x314   :  { %v1098_v37 = vmul.f32 %v4314_v36, %v1062_v23  ;;  %3700 = vrsqrt.f32 %v1003_v38  ;;  %v973_v11 = vmul.f32 %v4482_v21, %v4482_v21  ;;  %v3151_v0 = vpop.f32.mrb[46].mxu0  ;;  %3209 = vmatmul.mubr.f32.gmra.mrb[64].mxu1 %v1162_v48  ;;  %v1164_v53 = vmax.f32 %v1132_v60, 0.0 }
 0x315   :  { %v3691_v6 = vpop.eup %3690  ;;  %v1097_v49 = vmul.f32 %v4314_v36, %v1061_v25  ;;  %v1006_v29 = vadd.f32 1e-05, %v974_v42  ;;  %v944_v39 = vsub.f32 %v4219_v55, %v3151_v0  ;;  %v904_v63 = vpop.f32.mrb[47].mxu0  ;;  %v1163_v22 = vmax.f32 %v1131_v51, 0.0 }
 0x316   :  { %v3693_v8 = vpop.eup %3692  ;;  %v1064_v52 = vmul.f32 %v3691_v6, %v4430_v17  ;;  %v1005_v61 = vadd.f32 1e-05, %v973_v11  ;;  %v943_v10 = vsub.f32 %v4223_v58, %v904_v63  ;;  %v1134_v43 = vadd.f32 %v4325_v56, %v1098_v37 }
 0x317   :  { %v1063_v3 = vmul.f32 %v3693_v8, %v4434_v59  ;;  %3702 = vrsqrt.f32 %v1006_v29  ;;  %v976_v13 = vmul.f32 %v944_v39, %v944_v39  ;;  %3211 = vmatprep.mubr.f32.mxu1 %v1163_v22  ;;  %v1133_v5 = vadd.f32 %v4325_v56, %v1097_v49 }
 0x318   :  { %v1100_v62 = vmul.f32 %v4314_v36, %v1064_v52  ;;  %3704 = vrsqrt.f32 %v1005_v61  ;;  %v975_v55 = vmul.f32 %v943_v10, %v943_v10  ;;  %3212 = vmatmul.mubr.f32.gmra.mrb[66].mxu1 %v1164_v53  ;;  %v1166_v59 = vmax.f32 %v1134_v43, 0.0 }
 0x319   :  { %v3695_v41 = vpop.eup %3694  ;;  %v1099_v17 = vmul.f32 %v4314_v36, %v1063_v3  ;;  %v1008_v30 = vadd.f32 1e-05, %v976_v13  ;;  %v1165_v15 = vmax.f32 %v1133_v5, 0.0 }
 0x31a   :  { %v3697_v58 = vpop.eup %3696  ;;  %v1066_v7 = vmul.f32 %v3695_v41, %v4446_v40  ;;  %v1007_v44 = vadd.f32 1e-05, %v975_v55  ;;  %v1136_v9 = vadd.f32 %v4325_v56, %v1100_v62 }
 0x31b   :  { %v1065_v24 = vmul.f32 %v3697_v58, %v4450_v27  ;;  %3706 = vrsqrt.f32 %v1008_v30  ;;  %3214 = vmatprep.mubr.f32.mxu1 %v1165_v15  ;;  %v1135_v18 = vadd.f32 %v4325_v56, %v1099_v17 }
 0x31c   :  { %v1102_v19 = vmul.f32 %v4314_v36, %v1066_v7  ;;  %3708 = vrsqrt.f32 %v1007_v44  ;;  %3215 = vmatmul.mubr.f32.gmra.mrb[68].mxu1 %v1166_v59  ;;  %v1168_v31 = vmax.f32 %v1136_v9, 0.0 }
 0x31d   :  { %v3699_v26 = vpop.eup %3698  ;;  %v1101_v57 = vmul.f32 %v4314_v36, %v1065_v24  ;;  %v1167_v14 = vmax.f32 %v1135_v18, 0.0 }
 0x31e   :  { %v3701_v12 = vpop.eup %3700  ;;  %v1068_v40 = vmul.f32 %v3699_v26, %v4462_v54  ;;  %v1138_v32 = vadd.f32 %v4325_v56, %v1102_v19 }
 0x31f   :  { %v1067_v27 = vmul.f32 %v3701_v12, %v4466_v45  ;;  %3217 = vmatprep.mubr.f32.mxu1 %v1167_v14  ;;  %v1137_v16 = vadd.f32 %v4325_v56, %v1101_v57 }
 0x320   :  { %v1104_v46 = vmul.f32 %v4314_v36, %v1068_v40  ;;  %3218 = vmatmul.mubr.f32.gmra.mrb[70].mxu1 %v1168_v31  ;;  %v1170_v33 = vmax.f32 %v1138_v32, 0.0  ;;  %v2260_v31 = vld [vmem:[#allocation7] sm:$0xff]  ;;  %v2261_v32 = vld [vmem:[#allocation7 + $0x8] sm:$0xff] }
 0x321   :  { %v3703_v4 = vpop.eup %3702  ;;  %v1103_v50 = vmul.f32 %v4314_v36, %v1067_v27  ;;  %v1169_v2 = vmax.f32 %v1137_v16, 0.0  ;;  %v2262_v27 = vld [vmem:[#allocation7 + $0x10] sm:$0xff]  ;;  %v3592_v16 = vpack.c.bf16 %v2261_v32, %v2260_v31 }
 0x322   :  { %v3705_v48 = vpop.eup %3704  ;;  %v1070_v34 = vmul.f32 %v3703_v4, %v4478_v47  ;;  %v1140_v54 = vadd.f32 %v4325_v56, %v1104_v46  ;;  %v2263_v46 = vld [vmem:[#allocation7 + $0x18] sm:$0xff] }
 0x323   :  { %v1069_v1 = vmul.f32 %v3705_v48, %v4482_v21  ;;  %3220 = vmatprep.mubr.f32.mxu1 %v1169_v2  ;;  %v1139_v45 = vadd.f32 %v4325_v56, %v1103_v50  ;;  %v3596_v4 = vpack.c.bf16 %v2263_v46, %v2262_v27  ;;  %v2264_v50 = vld [vmem:[#allocation7 + $0x20] sm:$0xff]  ;;  %v2265_v2 = vld [vmem:[#allocation7 + $0x28] sm:$0xff]  ;;  %3593 = vmatprep.subr.bf16.mxu0 %v3592_v16 }
 0x324   :  { %v1106_v35 = vmul.f32 %v4314_v36, %v1070_v34  ;;  %3221 = vmatmul.mubr.f32.gmra.mrb[72].mxu1 %v1170_v33  ;;  %v1172_v25 = vmax.f32 %v1140_v54, 0.0  ;;  %v3600_v48 = vpack.c.bf16 %v2265_v2, %v2264_v50  ;;  %v2266_v34 = vld [vmem:[#allocation7 + $0x30] sm:$0xff]  ;;  %v2267_v33 = vld [vmem:[#allocation7 + $0x38] sm:$0xff] }
 0x325   :  { %v3707_v20 = vpop.eup %3706  ;;  %v1105_v28 = vmul.f32 %v4314_v36, %v1069_v1  ;;  %v1171_v23 = vmax.f32 %v1139_v45, 0.0  ;;  %v3604_v54 = vpack.c.bf16 %v2267_v33, %v2266_v34  ;;  %v2268_v1 = vld [vmem:[#allocation7 + $0x40] sm:$0xff]  ;;  %v2269_v45 = vld [vmem:[#allocation7 + $0x48] sm:$0xff] }
 0x326   :  { %v3709_v38 = vpop.eup %3708  ;;  %v1072_v60 = vmul.f32 %v3707_v20, %v944_v39  ;;  %v1142_v47 = vadd.f32 %v4325_v56, %v1106_v35  ;;  %v3608_v35 = vpack.c.bf16 %v2269_v45, %v2268_v1 }
 0x327   :  { %v1071_v42 = vmul.f32 %v3709_v38, %v943_v10  ;;  %3223 = vmatprep.mubr.f32.mxu1 %v1171_v23  ;;  %v1141_v51 = vadd.f32 %v4325_v56, %v1105_v28 }
 0x328   :  { %v1108_v21 = vmul.f32 %v4314_v36, %v1072_v60  ;;  %3224 = vmatmul.mubr.f32.gmra.mrb[74].mxu1 %v1172_v25  ;;  %v1174_v0 = vmax.f32 %v1142_v47, 0.0 }
 0x329   :  { %v1107_v37 = vmul.f32 %v4314_v36, %v1071_v42  ;;  %v1173_v11 = vmax.f32 %v1141_v51, 0.0 }
 0x32a   :  { %v1144_v53 = vadd.f32 %v4325_v56, %v1108_v21 }
 0x32b   :  { %3226 = vmatprep.mubr.f32.mxu1 %v1173_v11  ;;  %v1143_v6 = vadd.f32 %v4325_v56, %v1107_v37 }
 0x32c   :  { %3227 = vmatmul.mubr.f32.gmra.mrb[76].mxu1 %v1174_v0  ;;  %v1176_v29 = vmax.f32 %v1144_v53, 0.0 }
 0x32d   :  { %v1175_v49 = vmax.f32 %v1143_v6, 0.0 }
 0x32f   :  { %3229 = vmatprep.mubr.f32.mxu1 %v1175_v49 }
 0x330   :  { %3230 = vmatmul.mubr.f32.gmra.mrb[78].mxu1 %v1176_v29 }
 0x3c7   :  { %v4525_v39 = vpop.f32.mrb[48].mxu1 }
 0x3c8   :  { %v4527_v63 = vpop.f32.mrb[49].mxu1 }
 0x3c9   :  { %3264 = vmatprep.mubr.f32.mxu0 %v4527_v63 }
 0x3ca   :  { %3265 = vmatmul.mubr.f32.vlgmr.msra.gmra.mrb[48].mxu0 %v4525_v39 }
 0x3cb   :  { %v4531_v36 = vpop.f32.mrb[50].mxu1  ;;  %3595 = vmatpush3.bf16.msra.mxu0 %v3592_v16 }
 0x3cc   :  { %v4533_v22 = vpop.f32.mrb[51].mxu1  ;;  %3597 = vmatprep.subr.bf16.mxu0 %v3596_v4 }
 0x3cd   :  { %3267 = vmatprep.mubr.f32.mxu0 %v4533_v22 }
 0x3ce   :  { %3268 = vmatmul.mubr.f32.gmra.mrb[50].mxu0 %v4531_v36 }
 0x3cf   :  { %v4537_v56 = vpop.f32.mrb[52].mxu1  ;;  %3599 = vmatpush3.bf16.msra.mxu0 %v3596_v4 }
 0x3d0   :  { %v4539_v8 = vpop.f32.mrb[53].mxu1  ;;  %3601 = vmatprep.subr.bf16.mxu0 %v3600_v48 }
 0x3d1   :  { %3270 = vmatprep.mubr.f32.mxu0 %v4539_v8 }
 0x3d2   :  { %3271 = vmatmul.mubr.f32.gmra.mrb[52].mxu0 %v4537_v56 }
 0x3d3   :  { %v4543_v52 = vpop.f32.mrb[54].mxu1  ;;  %3603 = vmatpush3.bf16.msra.mxu0 %v3600_v48 }
 0x3d4   :  { %v4545_v61 = vpop.f32.mrb[55].mxu1  ;;  %3605 = vmatprep.subr.bf16.mxu0 %v3604_v54 }
 0x3d5   :  { %3273 = vmatprep.mubr.f32.mxu0 %v4545_v61 }
 0x3d6   :  { %3274 = vmatmul.mubr.f32.gmra.mrb[54].mxu0 %v4543_v52 }
 0x3d7   :  { %v4549_v10 = vpop.f32.mrb[56].mxu1  ;;  %3607 = vmatpush3.bf16.msra.mxu0 %v3604_v54 }
 0x3d8   :  { %v4551_v43 = vpop.f32.mrb[57].mxu1  ;;  %3609 = vmatprep.subr.bf16.mxu0 %v3608_v35 }
 0x3d9   :  { %3276 = vmatprep.mubr.f32.mxu0 %v4551_v43 }
 0x3da   :  { %3277 = vmatmul.mubr.f32.gmra.mrb[56].mxu0 %v4549_v10 }
 0x3db   :  { %v4555_v3 = vpop.f32.mrb[58].mxu1  ;;  %3611 = vmatpush3.bf16.msra.mxu0 %v3608_v35 }
 0x3dc   :  { %v4557_v13 = vpop.f32.mrb[59].mxu1 }
 0x3dd   :  { %3279 = vmatprep.mubr.f32.mxu0 %v4557_v13 }
 0x3de   :  { %3280 = vmatmul.mubr.f32.gmra.mrb[58].mxu0 %v4555_v3 }
 0x3df   :  { %v4561_v5 = vpop.f32.mrb[60].mxu1 }
 0x3e0   :  { %v4563_v62 = vpop.f32.mrb[61].mxu1 }
 0x3e1   :  { %3282 = vmatprep.mubr.f32.mxu0 %v4563_v62 }
 0x3e2   :  { %3283 = vmatmul.mubr.f32.gmra.mrb[60].mxu0 %v4561_v5 }
 0x3e3   :  { %v4567_v55 = vpop.f32.mrb[62].mxu1 }
 0x3e4   :  { %v4569_v41 = vpop.f32.mrb[63].mxu1 }
 0x3e5   :  { %3285 = vmatprep.mubr.f32.mxu0 %v4569_v41 }
 0x3e6   :  { %3286 = vmatmul.mubr.f32.gmra.mrb[62].mxu0 %v4567_v55 }
 0x3e7   :  { %v4573_v17 = vpop.f32.mrb[64].mxu1 }
 0x3e8   :  { %v4575_v30 = vpop.f32.mrb[65].mxu1 }
 0x3e9   :  { %3288 = vmatprep.mubr.f32.mxu0 %v4575_v30 }
 0x3ea   :  { %3289 = vmatmul.mubr.f32.gmra.mrb[64].mxu0 %v4573_v17 }
 0x3eb   :  { %v4579_v15 = vpop.f32.mrb[66].mxu1 }
 0x3ec   :  { %v4581_v58 = vpop.f32.mrb[67].mxu1 }
 0x3ed   :  { %3291 = vmatprep.mubr.f32.mxu0 %v4581_v58 }
 0x3ee   :  { %3292 = vmatmul.mubr.f32.gmra.mrb[66].mxu0 %v4579_v15 }
 0x3ef   :  { %v4585_v7 = vpop.f32.mrb[68].mxu1 }
 0x3f0   :  { %v4587_v44 = vpop.f32.mrb[69].mxu1 }
 0x3f1   :  { %3294 = vmatprep.mubr.f32.mxu0 %v4587_v44 }
 0x3f2   :  { %3295 = vmatmul.mubr.f32.gmra.mrb[68].mxu0 %v4585_v7 }
 0x3f3   :  { %v4591_v59 = vpop.f32.mrb[70].mxu1 }
 0x3f4   :  { %v4593_v9 = vpop.f32.mrb[71].mxu1 }
 0x3f5   :  { %3297 = vmatprep.mubr.f32.mxu0 %v4593_v9 }
 0x3f6   :  { %3298 = vmatmul.mubr.f32.gmra.mrb[70].mxu0 %v4591_v59 }
 0x3f7   :  { %v4597_v24 = vpop.f32.mrb[72].mxu1 }
 0x3f8   :  { %v4599_v18 = vpop.f32.mrb[73].mxu1 }
 0x3f9   :  { %3300 = vmatprep.mubr.f32.mxu0 %v4599_v18 }
 0x3fa   :  { %3301 = vmatmul.mubr.f32.gmra.mrb[72].mxu0 %v4597_v24 }
 0x3fb   :  { %v4603_v19 = vpop.f32.mrb[74].mxu1 }
 0x3fc   :  { %v4605_v26 = vpop.f32.mrb[75].mxu1 }
 0x3fd   :  { %3303 = vmatprep.mubr.f32.mxu0 %v4605_v26 }
 0x3fe   :  { %3304 = vmatmul.mubr.f32.gmra.mrb[74].mxu0 %v4603_v19 }
 0x3ff   :  { %v4609_v57 = vpop.f32.mrb[76].mxu1 }
 0x400   :  { %v4611_v14 = vpop.f32.mrb[77].mxu1 }
 0x401   :  { %3306 = vmatprep.mubr.f32.mxu0 %v4611_v14 }
 0x402   :  { %3307 = vmatmul.mubr.f32.gmra.mrb[76].mxu0 %v4609_v57 }
 0x403   :  { %v4615_v12 = vpop.f32.mrb[78].mxu1 }
 0x404   :  { %v4617_v40 = vpop.f32.mrb[79].mxu1 }
 0x405   :  { %3309 = vmatprep.mubr.f32.mxu0 %v4617_v40 }
 0x406   :  { %3310 = vmatmul.mubr.f32.gmra.mrb[78].mxu0 %v4615_v12 }
 0x49d   :  { %v3266_v20 = vpop.f32.mrb[48].mxu0 }
 0x49e   :  { %v1484_v28 = vpop.f32.mrb[49].mxu0 }
 0x49f   :  { %3320 = vmatprep.mubr.msk.f32.mxu1 %vm591_vm0, %v1484_v28  ;;  %v2271_v28 = vld [vmem:[#allocation7 + $0x58] sm:$0xff] }
 0x4a0   :  { %3321 = vmatmul.mubr.msk.f32.vlgmr.msra.gmra.mrb[80].mxu1 %vm591_vm0, %v3266_v20  ;;  %v2270_v20 = vld [vmem:[#allocation7 + $0x50] sm:$0xff] }
 0x4a1   :  { %v3269_v23 = vpop.f32.mrb[50].mxu0 }
 0x4a2   :  { %v1494_v38 = vpop.f32.mrb[51].mxu0 }
 0x4a3   :  { %3323 = vmatprep.mubr.msk.f32.mxu1 %vm591_vm0, %v1494_v38  ;;  %v2272_v38 = vld [vmem:[#allocation7 + $0x60] sm:$0xff] }
 0x4a4   :  { %3324 = vmatmul.mubr.msk.f32.gmra.mrb[82].mxu1 %vm591_vm0, %v3269_v23  ;;  %v3612_v23 = vpack.c.bf16 %v2271_v28, %v2270_v20 }
 0x4a5   :  { %v3272_v60 = vpop.f32.mrb[52].mxu0 }
 0x4a6   :  { %v1504_v25 = vpop.f32.mrb[53].mxu0  ;;  %3613 = vmatprep.subr.bf16.mxu0 %v3612_v23 }
 0x4a7   :  { %3326 = vmatprep.mubr.msk.f32.mxu1 %vm591_vm0, %v1504_v25  ;;  %3615 = vmatpush3.bf16.msra.mxu0 %v3612_v23 }
 0x4a8   :  { %3327 = vmatmul.mubr.msk.f32.gmra.mrb[84].mxu1 %vm591_vm0, %v3272_v60  ;;  %v2273_v60 = vld [vmem:[#allocation7 + $0x68] sm:$0xff] }
 0x4a9   :  { %v3275_v47 = vpop.f32.mrb[54].mxu0  ;;  %v3616_v25 = vpack.c.bf16 %v2273_v60, %v2272_v38 }
 0x4aa   :  { %v1514_v42 = vpop.f32.mrb[55].mxu0 }
 0x4ab   :  { %3329 = vmatprep.mubr.msk.f32.mxu1 %vm591_vm0, %v1514_v42  ;;  %3617 = vmatprep.subr.bf16.mxu0 %v3616_v25  ;;  %v2275_v42 = vld [vmem:[#allocation7 + $0x78] sm:$0xff] }
 0x4ac   :  { %3330 = vmatmul.mubr.msk.f32.gmra.mrb[86].mxu1 %vm591_vm0, %v3275_v47  ;;  %3619 = vmatpush3.bf16.msra.mxu0 %v3616_v25  ;;  %v2274_v47 = vld [vmem:[#allocation7 + $0x70] sm:$0xff] }
 0x4ad   :  { %v3278_v51 = vpop.f32.mrb[56].mxu0 }
 0x4ae   :  { %v1524_v21 = vpop.f32.mrb[57].mxu0 }
 0x4af   :  { %3332 = vmatprep.mubr.msk.f32.mxu1 %vm591_vm0, %v1524_v21 }
 0x4b0   :  { %3333 = vmatmul.mubr.msk.f32.gmra.mrb[88].mxu1 %vm591_vm0, %v3278_v51  ;;  %v3620_v51 = vpack.c.bf16 %v2275_v42, %v2274_v47 }
 0x4b1   :  { %v3281_v37 = vpop.f32.mrb[58].mxu0 }
 0x4b2   :  { %v1534_v11 = vpop.f32.mrb[59].mxu0  ;;  %3621 = vmatprep.subr.bf16.mxu0 %v3620_v51 }
 0x4b3   :  { %3335 = vmatprep.mubr.msk.f32.mxu1 %vm591_vm0, %v1534_v11  ;;  %3623 = vmatpush3.bf16.msra.mxu0 %v3620_v51 }
 0x4b4   :  { %3336 = vmatmul.mubr.msk.f32.gmra.mrb[90].mxu1 %vm591_vm0, %v3281_v37 }
 0x4b5   :  { %v3284_v0 = vpop.f32.mrb[60].mxu0 }
 0x4b6   :  { %v1544_v53 = vpop.f32.mrb[61].mxu0 }
 0x4b7   :  { %3338 = vmatprep.mubr.msk.f32.mxu1 %vm591_vm0, %v1544_v53 }
 0x4b8   :  { %3339 = vmatmul.mubr.msk.f32.gmra.mrb[92].mxu1 %vm591_vm0, %v3284_v0 }
 0x4b9   :  { %v3287_v6 = vpop.f32.mrb[62].mxu0 }
 0x4ba   :  { %v1554_v49 = vpop.f32.mrb[63].mxu0 }
 0x4bb   :  { %3341 = vmatprep.mubr.msk.f32.mxu1 %vm591_vm0, %v1554_v49 }
 0x4bc   :  { %3342 = vmatmul.mubr.msk.f32.gmra.mrb[94].mxu1 %vm591_vm0, %v3287_v6 }
 0x4bd   :  { %v3290_v29 = vpop.f32.mrb[64].mxu0 }
 0x4be   :  { %v1564_v31 = vpop.f32.mrb[65].mxu0 }
 0x4bf   :  { %3344 = vmatprep.mubr.msk.f32.mxu1 %vm591_vm0, %v1564_v31 }
 0x4c0   :  { %3345 = vmatmul.mubr.msk.f32.gmra.mrb[96].mxu1 %vm591_vm0, %v3290_v29 }
 0x4c1   :  { %v3293_v32 = vpop.f32.mrb[66].mxu0 }
 0x4c2   :  { %v1574_v27 = vpop.f32.mrb[67].mxu0 }
 0x4c3   :  { %3347 = vmatprep.mubr.msk.f32.mxu1 %vm591_vm0, %v1574_v27 }
 0x4c4   :  { %3348 = vmatmul.mubr.msk.f32.gmra.mrb[98].mxu1 %vm591_vm0, %v3293_v32 }
 0x4c5   :  { %v3296_v16 = vpop.f32.mrb[68].mxu0 }
 0x4c6   :  { %v1584_v46 = vpop.f32.mrb[69].mxu0 }
 0x4c7   :  { %3350 = vmatprep.mubr.msk.f32.mxu1 %vm591_vm0, %v1584_v46 }
 0x4c8   :  { %3351 = vmatmul.mubr.msk.f32.gmra.mrb[100].mxu1 %vm591_vm0, %v3296_v16 }
 0x4c9   :  { %v3299_v4 = vpop.f32.mrb[70].mxu0 }
 0x4ca   :  { %v1594_v50 = vpop.f32.mrb[71].mxu0 }
 0x4cb   :  { %3353 = vmatprep.mubr.msk.f32.mxu1 %vm591_vm0, %v1594_v50 }
 0x4cc   :  { %3354 = vmatmul.mubr.msk.f32.gmra.mrb[102].mxu1 %vm591_vm0, %v3299_v4 }
 0x4cd   :  { %v3302_v2 = vpop.f32.mrb[72].mxu0 }
 0x4ce   :  { %v1604_v48 = vpop.f32.mrb[73].mxu0 }
 0x4cf   :  { %3356 = vmatprep.mubr.msk.f32.mxu1 %vm591_vm0, %v1604_v48 }
 0x4d0   :  { %3357 = vmatmul.mubr.msk.f32.gmra.mrb[104].mxu1 %vm591_vm0, %v3302_v2 }
 0x4d1   :  { %v3305_v34 = vpop.f32.mrb[74].mxu0 }
 0x4d2   :  { %v1614_v33 = vpop.f32.mrb[75].mxu0 }
 0x4d3   :  { %3359 = vmatprep.mubr.msk.f32.mxu1 %vm591_vm0, %v1614_v33 }
 0x4d4   :  { %3360 = vmatmul.mubr.msk.f32.gmra.mrb[106].mxu1 %vm591_vm0, %v3305_v34 }
 0x4d5   :  { %v3308_v54 = vpop.f32.mrb[76].mxu0 }
 0x4d6   :  { %v1624_v1 = vpop.f32.mrb[77].mxu0 }
 0x4d7   :  { %3362 = vmatprep.mubr.msk.f32.mxu1 %vm591_vm0, %v1624_v1 }
 0x4d8   :  { %3363 = vmatmul.mubr.msk.f32.gmra.mrb[108].mxu1 %vm591_vm0, %v3308_v54 }
 0x4d9   :  { %v3311_v45 = vpop.f32.mrb[78].mxu0 }
 0x4da   :  { %v1634_v35 = vpop.f32.mrb[79].mxu0 }
 0x4db   :  { %3365 = vmatprep.mubr.msk.f32.mxu1 %vm591_vm0, %v1634_v35 }
 0x4dc   :  { %3366 = vmatmul.mubr.msk.f32.gmra.mrb[110].mxu1 %vm591_vm0, %v3311_v45 }
 0x573   :  { %v3322_v21 = vpop.f32.mrb[80].mxu1 }
 0x574   :  { %v1965_v37 = vsub.f32 %v4525_v39, %v3322_v21  ;;  %v1805_v11 = vpop.f32.mrb[81].mxu1  ;;  %v4691_v21 = vld [vmem:[%s4970_s4 + $0x3] ss:$0 sm:$0xff] }
 0x575   :  { %v1964_v0 = vsub.f32 %v4527_v63, %v1805_v11 }
 0x576   :  { %v1997_v53 = vmul.f32 %v1965_v37, %v1965_v37 }
 0x577   :  { %v1996_v6 = vmul.f32 %v1964_v0, %v1964_v0  ;;  %v3325_v49 = vpop.f32.mrb[82].mxu1 }
 0x578   :  { %v2029_v29 = vadd.f32 1e-05, %v1997_v53  ;;  %v1967_v31 = vsub.f32 %v4531_v36, %v3325_v49  ;;  %v1815_v32 = vpop.f32.mrb[83].mxu1 }
 0x579   :  { %v2028_v27 = vadd.f32 1e-05, %v1996_v6  ;;  %v1966_v16 = vsub.f32 %v4533_v22, %v1815_v32 }
 0x57a   :  { %3710 = vrsqrt.f32 %v2029_v29  ;;  %v1999_v46 = vmul.f32 %v1967_v31, %v1967_v31 }
 0x57b   :  { %3712 = vrsqrt.f32 %v2028_v27  ;;  %v1998_v4 = vmul.f32 %v1966_v16, %v1966_v16  ;;  %v3328_v50 = vpop.f32.mrb[84].mxu1 }
 0x57c   :  { %v2031_v2 = vadd.f32 1e-05, %v1999_v46  ;;  %v4658_v39 = vsub.f32 %v4537_v56, %v3328_v50  ;;  %v1825_v63 = vpop.f32.mrb[85].mxu1 }
 0x57d   :  { %v2030_v48 = vadd.f32 1e-05, %v1998_v4  ;;  %v4661_v34 = vsub.f32 %v4539_v8, %v1825_v63 }
 0x57e   :  { %3714 = vrsqrt.f32 %v2031_v2  ;;  %v2001_v36 = vmul.f32 %v4658_v39, %v4658_v39 }
 0x57f   :  { %3716 = vrsqrt.f32 %v2030_v48  ;;  %v2000_v22 = vmul.f32 %v4661_v34, %v4661_v34  ;;  %v3331_v33 = vpop.f32.mrb[86].mxu1 }
 0x580   :  { %v2033_v54 = vadd.f32 1e-05, %v2001_v36  ;;  %v4668_v1 = vsub.f32 %v4543_v52, %v3331_v33  ;;  %v1835_v56 = vpop.f32.mrb[87].mxu1  ;;  %v4680_v52 = vld [vmem:[%s4970_s4 + $0x2] ss:$0 sm:$0xff] }
 0x581   :  { %v2032_v45 = vadd.f32 1e-05, %v2000_v22  ;;  %v4671_v35 = vsub.f32 %v4545_v61, %v1835_v56  ;;  %v3774_v22 = vld [vmem:[#allocation2 + $0x8] sm:$0xff] }
 0x582   :  { %3718 = vrsqrt.f32 %v2033_v54  ;;  %v2003_v8 = vmul.f32 %v4668_v1, %v4668_v1 }
 0x583   :  { %3720 = vrsqrt.f32 %v2032_v45  ;;  %v2002_v20 = vmul.f32 %v4671_v35, %v4671_v35  ;;  %v3334_v28 = vpop.f32.mrb[88].mxu1 }
 0x584   :  { %v3711_v23 = vpop.eup %3710  ;;  %v2035_v38 = vadd.f32 1e-05, %v2003_v8  ;;  %v4683_v60 = vsub.f32 %v4549_v10, %v3334_v28  ;;  %v1845_v61 = vpop.f32.mrb[89].mxu1 }
 0x585   :  { %v3713_v25 = vpop.eup %3712  ;;  %v2093_v47 = vmul.f32 %v3711_v23, %v1965_v37  ;;  %v2034_v42 = vadd.f32 1e-05, %v2002_v20  ;;  %v4686_v51 = vsub.f32 %v4551_v43, %v1845_v61  ;;  %v3775_v20 = vld [vmem:[#allocation2] sm:$0xff] }
 0x586   :  { %v2092_v11 = vmul.f32 %v3713_v25, %v1964_v0  ;;  %3722 = vrsqrt.f32 %v2035_v38  ;;  %v2005_v53 = vmul.f32 %v4683_v60, %v4683_v60 }
 0x587   :  { %v2129_v10 = vmul.f32 %v4680_v52, %v2093_v47  ;;  %3724 = vrsqrt.f32 %v2034_v42  ;;  %v2004_v37 = vmul.f32 %v4686_v51, %v4686_v51  ;;  %v3337_v6 = vpop.f32.mrb[90].mxu1 }
 0x588   :  { %v3715_v49 = vpop.eup %3714  ;;  %v2128_v43 = vmul.f32 %v4680_v52, %v2092_v11  ;;  %v2037_v29 = vadd.f32 1e-05, %v2005_v53  ;;  %v4700_v32 = vsub.f32 %v4555_v3, %v3337_v6  ;;  %v1855_v27 = vpop.f32.mrb[91].mxu1 }
 0x589   :  { %v3717_v0 = vpop.eup %3716  ;;  %v2165_v46 = vadd.f32 %v4691_v21, %v2129_v10  ;;  %v2095_v4 = vmul.f32 %v3715_v49, %v1967_v31  ;;  %v2036_v50 = vadd.f32 1e-05, %v2004_v37  ;;  %v4704_v2 = vsub.f32 %v4557_v13, %v1855_v27 }
 0x58a   :  { %v2094_v63 = vmul.f32 %v3717_v0, %v1966_v16  ;;  %3726 = vrsqrt.f32 %v2037_v29  ;;  %v2007_v48 = vmul.f32 %v4700_v32, %v4700_v32  ;;  %v2164_v36 = vadd.f32 %v4691_v21, %v2128_v43 }
 0x58b   :  { %v2197_v33 = vadd.f32 %v3774_v22, %v2165_v46  ;;  %v2131_v3 = vmul.f32 %v4680_v52, %v2095_v4  ;;  %3728 = vrsqrt.f32 %v2036_v50  ;;  %v2006_v54 = vmul.f32 %v4704_v2, %v4704_v2  ;;  %v3340_v31 = vpop.f32.mrb[92].mxu1  ;;  %v3776_v50 = vld [vmem:[#allocation2 + $0x10] sm:$0xff] }
 0x58c   :  { %v3719_v56 = vpop.eup %3718  ;;  %v2130_v13 = vmul.f32 %v4680_v52, %v2094_v63  ;;  %v2039_v45 = vadd.f32 1e-05, %v2007_v48  ;;  %v4714_v16 = vsub.f32 %v4561_v5, %v3340_v31  ;;  %v1865_v8 = vpop.f32.mrb[93].mxu1  ;;  %v2196_v28 = vadd.f32 %v3775_v20, %v2164_v36  ;;  %v3777_v36 = vld [vmem:[#allocation2 + $0x18] sm:$0xff] }
 0x58d   :  { %v3721_v23 = vpop.eup %3720  ;;  %v2229_v38 = vmax.f32 %v2197_v33, 0.0  ;;  %v2097_v61 = vmul.f32 %v3719_v56, %v4658_v39  ;;  %v2038_v25 = vadd.f32 1e-05, %v2006_v54  ;;  %v4718_v47 = vsub.f32 %v4563_v62, %v1865_v8 }
 0x58e   :  { %v2096_v42 = vmul.f32 %v3721_v23, %v4661_v34  ;;  %3730 = vrsqrt.f32 %v2039_v45  ;;  %v2009_v11 = vmul.f32 %v4714_v16, %v4714_v16  ;;  %v2228_v53 = vmax.f32 %v2196_v28, 0.0 }
 0x58f   :  { %v2133_v5 = vmul.f32 %v4680_v52, %v2097_v61  ;;  %3732 = vrsqrt.f32 %v2038_v25  ;;  %v2008_v10 = vmul.f32 %v4718_v47, %v4718_v47  ;;  %v3343_v37 = vpop.f32.mrb[94].mxu1  ;;  %v2166_v39 = vadd.f32 %v4691_v21, %v2130_v13 }
 0x590   :  { %v3723_v6 = vpop.eup %3722  ;;  %v2132_v62 = vmul.f32 %v4680_v52, %v2096_v42  ;;  %v2041_v49 = vadd.f32 1e-05, %v2009_v11  ;;  %v4729_v34 = vsub.f32 %v4567_v55, %v3343_v37  ;;  %v1875_v43 = vpop.f32.mrb[95].mxu1  ;;  %3400 = vmatprep.mubr.f32.mxu0 %v2228_v53  ;;  %v2167_v29 = vadd.f32 %v4691_v21, %v2131_v3  ;;  %v3778_v42 = vld [vmem:[#allocation2 + $0x20] sm:$0xff] }
 0x591   :  { %v3725_v27 = vpop.eup %3724  ;;  %v2099_v0 = vmul.f32 %v3723_v6, %v4668_v1  ;;  %v2040_v46 = vadd.f32 1e-05, %v2008_v10  ;;  %v4734_v4 = vsub.f32 %v4569_v41, %v1875_v43  ;;  %3401 = vmatmul.mubr.f32.vlgmr.msra.gmra.mrb[80].mxu0 %v2229_v38  ;;  %v2198_v63 = vadd.f32 %v3776_v50, %v2166_v39 }
 0x592   :  { %v2098_v48 = vmul.f32 %v3725_v27, %v4671_v35  ;;  %3734 = vrsqrt.f32 %v2041_v49  ;;  %v2011_v55 = vmul.f32 %v4729_v34, %v4729_v34  ;;  %v2199_v22 = vadd.f32 %v3777_v36, %v2167_v29 }
 0x593   :  { %3736 = vrsqrt.f32 %v2040_v46  ;;  %v2010_v33 = vmul.f32 %v4734_v4, %v4734_v4  ;;  %v3346_v1 = vpop.f32.mrb[96].mxu1  ;;  %v2230_v3 = vmax.f32 %v2198_v63, 0.0  ;;  %v2135_v41 = vmul.f32 %v4680_v52, %v2099_v0 }
 0x594   :  { %v3727_v54 = vpop.eup %3726  ;;  %v2043_v31 = vadd.f32 1e-05, %v2011_v55  ;;  %v4743_v56 = vsub.f32 %v4573_v17, %v3346_v1  ;;  %v1885_v35 = vpop.f32.mrb[97].mxu1  ;;  %v2231_v13 = vmax.f32 %v2199_v22, 0.0  ;;  %v2168_v23 = vadd.f32 %v4691_v21, %v2132_v62  ;;  %v3779_v62 = vld [vmem:[#allocation2 + $0x28] sm:$0xff] }
 0x595   :  { %v3729_v45 = vpop.eup %3728  ;;  %v2101_v8 = vmul.f32 %v3727_v54, %v4683_v60  ;;  %v2042_v20 = vadd.f32 1e-05, %v2010_v33  ;;  %v4747_v28 = vsub.f32 %v4575_v30, %v1885_v35  ;;  %3403 = vmatprep.mubr.f32.mxu0 %v2230_v3  ;;  %v2134_v38 = vmul.f32 %v4680_v52, %v2098_v48  ;;  %v3780_v35 = vld [vmem:[#allocation2 + $0x30] sm:$0xff] }
 0x596   :  { %3738 = vrsqrt.f32 %v2043_v31  ;;  %v2013_v61 = vmul.f32 %v4743_v56, %v4743_v56  ;;  %3404 = vmatmul.mubr.f32.gmra.mrb[82].mxu0 %v2231_v13  ;;  %v2169_v17 = vadd.f32 %v4691_v21, %v2133_v5  ;;  %v2100_v25 = vmul.f32 %v3729_v45, %v4686_v51 }
 0x597   :  { %3740 = vrsqrt.f32 %v2042_v20  ;;  %v2012_v60 = vmul.f32 %v4747_v28, %v4747_v28  ;;  %v3349_v30 = vpop.f32.mrb[98].mxu1  ;;  %v2200_v11 = vadd.f32 %v3778_v42, %v2168_v23  ;;  %v2137_v10 = vmul.f32 %v4680_v52, %v2101_v8 }
 0x598   :  { %v3731_v53 = vpop.eup %3730  ;;  %v2045_v37 = vadd.f32 1e-05, %v2013_v61  ;;  %v4759_v39 = vsub.f32 %v4579_v15, %v3349_v30  ;;  %v1895_v6 = vpop.f32.mrb[99].mxu1  ;;  %v2201_v49 = vadd.f32 %v3779_v62, %v2169_v17  ;;  %v2136_v15 = vmul.f32 %v4680_v52, %v2100_v25 }
 0x599   :  { %v3733_v5 = vpop.eup %3732  ;;  %v2103_v51 = vmul.f32 %v3731_v53, %v4700_v32  ;;  %v2044_v43 = vadd.f32 1e-05, %v2012_v60  ;;  %v4763_v29 = vsub.f32 %v4581_v58, %v1895_v6  ;;  %v2232_v27 = vmax.f32 %v2200_v11, 0.0 }
 0x59a   :  { %v2102_v0 = vmul.f32 %v3733_v5, %v4704_v2  ;;  %3742 = vrsqrt.f32 %v2045_v37  ;;  %v2015_v46 = vmul.f32 %v4759_v39, %v4759_v39  ;;  %v2233_v50 = vmax.f32 %v2201_v49, 0.0  ;;  %v3782_v5 = vld [vmem:[#allocation2 + $0x40] sm:$0xff] }
 0x59b   :  { %3744 = vrsqrt.f32 %v2044_v43  ;;  %v2014_v63 = vmul.f32 %v4763_v29, %v4763_v29  ;;  %3406 = vmatprep.mubr.f32.mxu0 %v2232_v27  ;;  %v3352_v32 = vpop.f32.mrb[100].mxu1  ;;  %v2170_v48 = vadd.f32 %v4691_v21, %v2134_v38  ;;  %v4773_v55 = vmul.f32 %v4680_v52, %v2103_v51 }
 0x59c   :  { %v3735_v58 = vpop.eup %3734  ;;  %v2047_v2 = vadd.f32 1e-05, %v2015_v46  ;;  %3407 = vmatmul.mubr.f32.gmra.mrb[84].mxu0 %v2233_v50  ;;  %v4776_v36 = vsub.f32 %v4585_v7, %v3352_v32  ;;  %v1905_v22 = vpop.f32.mrb[101].mxu1  ;;  %v2171_v33 = vadd.f32 %v4691_v21, %v2135_v41  ;;  %v2138_v45 = vmul.f32 %v4680_v52, %v2102_v0  ;;  %v3781_v7 = vld [vmem:[#allocation2 + $0x38] sm:$0xff]  ;;  %v3783_v0 = vld [vmem:[#allocation2 + $0x48] sm:$0xff] }
 0x59d   :  { %v3737_v1 = vpop.eup %3736  ;;  %v2105_v3 = vmul.f32 %v3735_v58, %v4714_v16  ;;  %v2046_v54 = vadd.f32 1e-05, %v2014_v63  ;;  %v4781_v31 = vsub.f32 %v4587_v44, %v1905_v22  ;;  %v2202_v13 = vadd.f32 %v3780_v35, %v2170_v48 }
 0x59e   :  { %3746 = vrsqrt.f32 %v2047_v2  ;;  %v2017_v8 = vmul.f32 %v4776_v36, %v4776_v36  ;;  %v2203_v20 = vadd.f32 %v3781_v7, %v2171_v33  ;;  %v2104_v23 = vmul.f32 %v3737_v1, %v4718_v47 }
 0x59f   :  { %3748 = vrsqrt.f32 %v2046_v54  ;;  %v2016_v16 = vmul.f32 %v4781_v31, %v4781_v31  ;;  %v2234_v41 = vmax.f32 %v2202_v13, 0.0  ;;  %v3355_v38 = vpop.f32.mrb[102].mxu1  ;;  %v4790_v61 = vmul.f32 %v4680_v52, %v2105_v3 }
 0x5a0   :  { %v3739_v44 = vpop.eup %3738  ;;  %v2049_v17 = vadd.f32 1e-05, %v2017_v8  ;;  %v2235_v25 = vmax.f32 %v2203_v20, 0.0  ;;  %v4793_v60 = vsub.f32 %v4591_v59, %v3355_v38  ;;  %v1915_v30 = vpop.f32.mrb[103].mxu1  ;;  %v2172_v37 = vadd.f32 %v4691_v21, %v2136_v15 }
 0x5a1   :  { %v3741_v42 = vpop.eup %3740  ;;  %v2107_v11 = vmul.f32 %v3739_v44, %v4729_v34  ;;  %v2048_v47 = vadd.f32 1e-05, %v2016_v16  ;;  %3409 = vmatprep.mubr.f32.mxu0 %v2234_v41  ;;  %v4797_v53 = vsub.f32 %v4593_v9, %v1915_v30  ;;  %v2173_v59 = vadd.f32 %v4691_v21, %v2137_v10  ;;  %v3784_v16 = vld [vmem:[#allocation2 + $0x50] sm:$0xff]  ;;  %v3785_v44 = vld [vmem:[#allocation2 + $0x58] sm:$0xff] }
 0x5a2   :  { %v2106_v6 = vmul.f32 %v3741_v42, %v4734_v4  ;;  %3750 = vrsqrt.f32 %v2049_v17  ;;  %3410 = vmatmul.mubr.f32.gmra.mrb[86].mxu0 %v2235_v25  ;;  %v2019_v62 = vmul.f32 %v4793_v60, %v4793_v60  ;;  %v2140_v49 = vmul.f32 %v4680_v52, %v2104_v23 }
 0x5a3   :  { %3752 = vrsqrt.f32 %v2048_v47  ;;  %v2018_v34 = vmul.f32 %v4797_v53, %v4797_v53  ;;  %v2204_v9 = vadd.f32 %v3782_v5, %v2172_v37  ;;  %v3358_v51 = vpop.f32.mrb[104].mxu1  ;;  %v4808_v27 = vmul.f32 %v4680_v52, %v2107_v11 }
 0x5a4   :  { %v3743_v43 = vpop.eup %3742  ;;  %v2051_v4 = vadd.f32 1e-05, %v2019_v62  ;;  %v2205_v46 = vadd.f32 %v3783_v0, %v2173_v59  ;;  %v4811_v50 = vsub.f32 %v4597_v24, %v3358_v51  ;;  %v1925_v10 = vpop.f32.mrb[105].mxu1  ;;  %v2142_v2 = vmul.f32 %v4680_v52, %v2106_v6  ;;  %v3786_v51 = vld [vmem:[#allocation2 + $0x60] sm:$0xff] }
 0x5a5   :  { %v3745_v15 = vpop.eup %3744  ;;  %v2109_v63 = vmul.f32 %v3743_v43, %v4743_v56  ;;  %v2050_v32 = vadd.f32 1e-05, %v2018_v34  ;;  %v2236_v48 = vmax.f32 %v2204_v9, 0.0  ;;  %v4815_v58 = vsub.f32 %v4599_v18, %v1925_v10 }
 0x5a6   :  { %3754 = vrsqrt.f32 %v2051_v4  ;;  %v2237_v22 = vmax.f32 %v2205_v46, 0.0  ;;  %v2021_v33 = vmul.f32 %v4811_v50, %v4811_v50  ;;  %v2108_v1 = vmul.f32 %v3745_v15, %v4747_v28 }
 0x5a7   :  { %3756 = vrsqrt.f32 %v2050_v32  ;;  %3412 = vmatprep.mubr.f32.mxu0 %v2236_v48  ;;  %v2020_v24 = vmul.f32 %v4815_v58, %v4815_v58  ;;  %v2174_v56 = vadd.f32 %v4691_v21, %v2138_v45  ;;  %v3361_v3 = vpop.f32.mrb[106].mxu1  ;;  %v4825_v18 = vmul.f32 %v4680_v52, %v2109_v63 }
 0x5a8   :  { %v3747_v54 = vpop.eup %3746  ;;  %3413 = vmatmul.mubr.f32.gmra.mrb[88].mxu0 %v2237_v22  ;;  %v2053_v35 = vadd.f32 1e-05, %v2021_v33  ;;  %v2175_v13 = vadd.f32 %v4691_v21, %v4773_v55  ;;  %v4830_v8 = vsub.f32 %v4603_v19, %v3361_v3  ;;  %v1935_v28 = vpop.f32.mrb[107].mxu1  ;;  %v2144_v19 = vmul.f32 %v4680_v52, %v2108_v1  ;;  %v3788_v3 = vld [vmem:[#allocation2 + $0x70] sm:$0xff] }
 0x5a9   :  { %v3749_v7 = vpop.eup %3748  ;;  %v2111_v20 = vmul.f32 %v3747_v54, %v4759_v39  ;;  %v2052_v23 = vadd.f32 1e-05, %v2020_v24  ;;  %v2206_v45 = vadd.f32 %v3784_v16, %v2174_v56  ;;  %v4834_v41 = vsub.f32 %v4605_v26, %v1935_v28 }
 0x5aa   :  { %v2110_v38 = vmul.f32 %v3749_v7, %v4763_v29  ;;  %3758 = vrsqrt.f32 %v2053_v35  ;;  %v2207_v17 = vadd.f32 %v3785_v44, %v2175_v13  ;;  %v2023_v55 = vmul.f32 %v4830_v8, %v4830_v8  ;;  %v3789_v13 = vld [vmem:[#allocation2 + $0x78] sm:$0xff] }
 0x5ab   :  { %3760 = vrsqrt.f32 %v2052_v23  ;;  %v2238_v25 = vmax.f32 %v2206_v45, 0.0  ;;  %v2022_v39 = vmul.f32 %v4834_v41, %v4834_v41  ;;  %v3364_v30 = vpop.f32.mrb[108].mxu1  ;;  %v4843_v26 = vmul.f32 %v4680_v52, %v2111_v20 }
 0x5ac   :  { %v3751_v42 = vpop.eup %3750  ;;  %v2239_v11 = vmax.f32 %v2207_v17, 0.0  ;;  %v2055_v29 = vadd.f32 1e-05, %v2023_v55  ;;  %v2176_v47 = vadd.f32 %v4691_v21, %v2140_v49  ;;  %v1945_v37 = vpop.f32.mrb[109].mxu1  ;;  %v2177_v34 = vadd.f32 %v4691_v21, %v4790_v61 }
 0x5ad   :  { %v3753_v6 = vpop.eup %3752  ;;  %v2113_v62 = vmul.f32 %v3751_v42, %v4776_v36  ;;  %3415 = vmatprep.mubr.f32.mxu0 %v2238_v25  ;;  %v2054_v59 = vadd.f32 1e-05, %v2022_v39  ;;  %v4850_v5 = vsub.f32 %v4609_v57, %v3364_v30  ;;  %v2146_v9 = vmul.f32 %v4680_v52, %v2110_v38  ;;  %v3787_v36 = vld [vmem:[#allocation2 + $0x68] sm:$0xff]  ;;  %v3790_v30 = vld [vmem:[#allocation2 + $0x80] sm:$0xff] }
 0x5ae   :  { %3416 = vmatmul.mubr.f32.gmra.mrb[90].mxu0 %v2239_v11  ;;  %3762 = vrsqrt.f32 %v2055_v29  ;;  %v2208_v43 = vadd.f32 %v3786_v51, %v2176_v47  ;;  %v4854_v49 = vsub.f32 %v4611_v14, %v1945_v37  ;;  %v2112_v4 = vmul.f32 %v3753_v6, %v4781_v31  ;;  %v3792_v37 = vld [vmem:[#allocation2 + $0x90] sm:$0xff] }
 0x5af   :  { %3764 = vrsqrt.f32 %v2054_v59  ;;  %v2209_v0 = vadd.f32 %v3787_v36, %v2177_v34  ;;  %v2025_v61 = vmul.f32 %v4850_v5, %v4850_v5  ;;  %v3367_v46 = vpop.f32.mrb[110].mxu1  ;;  %v2149_v10 = vmul.f32 %v4680_v52, %v2113_v62  ;;  %v3793_v59 = vld [vmem:[#allocation2 + $0x98] sm:$0xff] }
 0x5b0   :  { %v3755_v57 = vpop.eup %3754  ;;  %v2240_v15 = vmax.f32 %v2208_v43, 0.0  ;;  %v2024_v63 = vmul.f32 %v4854_v49, %v4854_v49  ;;  %v2178_v32 = vadd.f32 %v4691_v21, %v2142_v2  ;;  %v1955_v14 = vpop.f32.mrb[111].mxu1  ;;  %v2179_v1 = vadd.f32 %v4691_v21, %v4808_v27 }
 0x5b1   :  { %v3757_v48 = vpop.eup %3756  ;;  %v2115_v31 = vmul.f32 %v3755_v57, %v4793_v60  ;;  %v2241_v22 = vmax.f32 %v2209_v0, 0.0  ;;  %v2057_v33 = vadd.f32 1e-05, %v2025_v61  ;;  %v4868_v35 = vsub.f32 %v4615_v12, %v3367_v46  ;;  %v3794_v46 = vld [vmem:[#allocation2 + $0xa0] sm:$0xff] }
 0x5b2   :  { %v2114_v24 = vmul.f32 %v3757_v48, %v4797_v53  ;;  %3418 = vmatprep.mubr.f32.mxu0 %v2240_v15  ;;  %v2056_v56 = vadd.f32 1e-05, %v2024_v63  ;;  %v2210_v54 = vadd.f32 %v3788_v3, %v2178_v32  ;;  %v2148_v2 = vmul.f32 %v4680_v52, %v2112_v4  ;;  %v3795_v63 = vld [vmem:[#allocation2 + $0xb0] sm:$0xff] }
 0x5b3   :  { %3419 = vmatmul.mubr.f32.gmra.mrb[92].mxu0 %v2241_v22  ;;  %3766 = vrsqrt.f32 %v2057_v33  ;;  %v2211_v60 = vadd.f32 %v3789_v13, %v2179_v1  ;;  %v4872_v28 = vsub.f32 %v4617_v40, %v1955_v14  ;;  %v2151_v27 = vmul.f32 %v4680_v52, %v2115_v31  ;;  %v3796_v33 = vld [vmem:[#allocation2 + $0xa8] sm:$0xff]  ;;  %v3797_v13 = vld [vmem:[#allocation2 + $0xc0] sm:$0xff] }
 0x5b4   :  { %v3759_v7 = vpop.eup %3758  ;;  %3768 = vrsqrt.f32 %v2056_v56  ;;  %v2242_v53 = vmax.f32 %v2210_v54, 0.0  ;;  %v2027_v20 = vmul.f32 %v4868_v35, %v4868_v35  ;;  %v2150_v12 = vmul.f32 %v4680_v52, %v2114_v24 }
 0x5b5   :  { %v3761_v23 = vpop.eup %3760  ;;  %v2243_v16 = vmax.f32 %v2211_v60, 0.0  ;;  %v2026_v45 = vmul.f32 %v4872_v28, %v4872_v28  ;;  %v2180_v38 = vadd.f32 %v4691_v21, %v2144_v19  ;;  %v2181_v17 = vadd.f32 %v4691_v21, %v4825_v18 }
 0x5b6   :  { %v2116_v40 = vmul.f32 %v3761_v23, %v4815_v58  ;;  %3421 = vmatprep.mubr.f32.mxu0 %v2242_v53  ;;  %v2059_v44 = vadd.f32 1e-05, %v2027_v20  ;;  %v2182_v55 = vadd.f32 %v4691_v21, %v2146_v9  ;;  %v2117_v25 = vmul.f32 %v3759_v7, %v4811_v50  ;;  %v3791_v58 = vld [vmem:[#allocation2 + $0x88] sm:$0xff]  ;;  %v3798_v20 = vld [vmem:[#allocation2 + $0xb8] sm:$0xff] }
 0x5b7   :  { %3422 = vmatmul.mubr.f32.gmra.mrb[94].mxu0 %v2243_v16  ;;  %v2058_v39 = vadd.f32 1e-05, %v2026_v45  ;;  %v2212_v42 = vadd.f32 %v3790_v30, %v2180_v38  ;;  %v2183_v11 = vadd.f32 %v4691_v21, %v4843_v26  ;;  %v2213_v47 = vadd.f32 %v3791_v58, %v2181_v17  ;;  %v3799_v17 = vld [vmem:[#allocation2 + $0xd0] sm:$0xff]  ;;  %v3800_v30 = vld [vmem:[#allocation2 + $0xc8] sm:$0xff] }
 0x5b8   :  { %v3763_v29 = vpop.eup %3762  ;;  %v2152_v19 = vmul.f32 %v4680_v52, %v2116_v40  ;;  %3770 = vrsqrt.f32 %v2059_v44  ;;  %v2214_v6 = vadd.f32 %v3792_v37, %v2182_v55  ;;  %v2184_v26 = vadd.f32 %v4691_v21, %v2148_v2 }
 0x5b9   :  { %v3765_v18 = vpop.eup %3764  ;;  %v2119_v62 = vmul.f32 %v3763_v29, %v4830_v8  ;;  %3772 = vrsqrt.f32 %v2058_v39  ;;  %v2244_v50 = vmax.f32 %v2212_v42, 0.0  ;;  %v2215_v34 = vadd.f32 %v3793_v59, %v2183_v11 }
 0x5ba   :  { %v2118_v9 = vmul.f32 %v3765_v18, %v4834_v41  ;;  %v2245_v51 = vmax.f32 %v2213_v47, 0.0  ;;  %v2246_v43 = vmax.f32 %v2214_v6, 0.0  ;;  %v2185_v36 = vadd.f32 %v4691_v21, %v2149_v10  ;;  %v3802_v47 = vld [vmem:[#allocation2 + $0xd8] sm:$0xff]  ;;  %v3803_v18 = vld [vmem:[#allocation2 + $0xf0] sm:$0xff] }
 0x5bb   :  { %v2155_v4 = vmul.f32 %v4680_v52, %v2119_v62  ;;  %3424 = vmatprep.mubr.f32.mxu0 %v2244_v50  ;;  %v2186_v0 = vadd.f32 %v4691_v21, %v2150_v12  ;;  %v2153_v61 = vmul.f32 %v4680_v52, %v2117_v25  ;;  %v2247_v8 = vmax.f32 %v2215_v34, 0.0  ;;  %v3804_v50 = vld [vmem:[#allocation2 + $0xe8] sm:$0xff] }
 0x5bc   :  { %3425 = vmatmul.mubr.f32.gmra.mrb[96].mxu0 %v2245_v51  ;;  %v2216_v57 = vadd.f32 %v3794_v46, %v2184_v26  ;;  %v2154_v41 = vmul.f32 %v4680_v52, %v2118_v9  ;;  %v2188_v14 = vadd.f32 %v4691_v21, %v2152_v19  ;;  %v2217_v1 = vadd.f32 %v3796_v33, %v2185_v36  ;;  %v4917_v26 = vld [vmem:[%s4970_s4 + $0x4] ss:$0 sm:$0xff]  ;;  %s3905_s4 = smov [#allocation8]  }
 0x5bd   :  { %v3767_v15 = vpop.eup %3766  ;;  %3427 = vmatprep.mubr.f32.mxu0 %v2246_v43  ;;  %v2218_v32 = vadd.f32 %v3795_v63, %v2186_v0  ;;  %v2191_v48 = vadd.f32 %v4691_v21, %v2155_v4  ;;  %v2187_v24 = vadd.f32 %v4691_v21, %v2151_v27  ;;  %v2189_v12 = vadd.f32 %v4691_v21, %v2153_v61  ;;  %s2542_s22 = sshll.u32 %s3905_s4, 4  ;;  %s2543_s22 = int_to_ptr.vmem [resolvable:$true] %s2542_s22 }
 0x5be   :  { %v3769_v31 = vpop.eup %3768  ;;  %v2121_v10 = vmul.f32 %v3767_v15, %v4850_v5  ;;  %v2248_v22 = vmax.f32 %v2216_v57, 0.0  ;;  %v2220_v60 = vadd.f32 %v3797_v13, %v2188_v14  ;;  %v2190_v7 = vadd.f32 %v4691_v21, %v2154_v41  ;;  %s3872_s23 = scalar_lea.vmem %s2543_s22, 4096  ;;  %p3877_p11 = scmp.lt.s32.totalorder %s2543_s22, %s2543_s22 }
 0x5bf   :  { %v2120_v56 = vmul.f32 %v3769_v31, %v4854_v49  ;;  %v2250_v2 = vmax.f32 %v2218_v32, 0.0  ;;  %v2249_v5 = vmax.f32 %v2217_v1, 0.0  ;;  %v2219_v23 = vadd.f32 %v3798_v20, %v2187_v24  ;;  %p3873_p10 = scmp.ne.s32.totalorder %s2543_s22, %s3872_s23  ;;  %p3878_p12 = scmp.lt.s32.totalorder %s3872_s23, %s3872_s23 }
 0x5c0   :  { %v2157_v3 = vmul.f32 %v4680_v52, %v2121_v10  ;;  %3428 = vmatmul.mubr.f32.gmra.mrb[98].mxu0 %v2247_v8  ;;  %v2252_v44 = vmax.f32 %v2220_v60, 0.0  ;;  %v2222_v55 = vadd.f32 %v3799_v17, %v2190_v7  ;;  %v2221_v42 = vadd.f32 %v3800_v30, %v2189_v12 }
 0x5c1   :  { %v2156_v54 = vmul.f32 %v4680_v52, %v2120_v56  ;;  %3430 = vmatprep.mubr.f32.mxu0 %v2248_v22  ;;  %v2251_v39 = vmax.f32 %v2219_v23, 0.0  ;;  %v2223_v37 = vadd.f32 %v3802_v47, %v2191_v48  ;;  %p3879_p13 = por %p3878_p12, %p3877_p11 }
 0x5c2   :  { %v3771_v53 = vpop.eup %3770  ;;  %v2193_v27 = vadd.f32 %v4691_v21, %v2157_v3  ;;  %v2254_v29 = vmax.f32 %v2222_v55, 0.0  ;;  %v2253_v58 = vmax.f32 %v2221_v42, 0.0 }
 0x5c3   :  { %v3773_v49 = vpop.eup %3772  ;;  %v2123_v16 = vmul.f32 %v3771_v53, %v4868_v35  ;;  %v2192_v45 = vadd.f32 %v4691_v21, %v2156_v54  ;;  %v2255_v62 = vmax.f32 %v2223_v37, 0.0  ;;  %p3880_p0 = pnand %p3879_p13, %p3873_p10 }
 0x5c4   :  { %v2122_v38 = vmul.f32 %v3773_v49, %v4872_v28  ;;  %3431 = vmatmul.mubr.f32.gmra.mrb[100].mxu0 %v2249_v5  ;;  %v3801_v28 = vld [vmem:[#allocation2 + $0xe0] sm:$0xff]  ;;  %v2225_v59 = vadd.f32 %v3804_v50, %v2193_v27 }
 0x5c5   :  { %v2159_v40 = vmul.f32 %v4680_v52, %v2123_v16  ;;  %3433 = vmatprep.mubr.f32.mxu0 %v2250_v2  ;;  %v2224_v19 = vadd.f32 %v3801_v28, %v2192_v45 }
 0x5c6   :  { %v2158_v25 = vmul.f32 %v4680_v52, %v2122_v38  ;;  %v2257_v9 = vmax.f32 %v2225_v59, 0.0 }
 0x5c7   :  { %v2195_v11 = vadd.f32 %v4691_v21, %v2159_v40  ;;  %v2256_v6 = vmax.f32 %v2224_v19, 0.0 }
 0x5c8   :  { %3434 = vmatmul.mubr.f32.gmra.mrb[102].mxu0 %v2251_v39  ;;  %v2194_v35 = vadd.f32 %v4691_v21, %v2158_v25  ;;  %v3805_v21 = vld [vmem:[#allocation2 + $0xf8] sm:$0xff] }
 0x5c9   :  { %3436 = vmatprep.mubr.f32.mxu0 %v2252_v44  ;;  %v2227_v51 = vadd.f32 %v3805_v21, %v2195_v11 }
 0x5ca   :  { %v2226_v52 = vadd.f32 %v3803_v18, %v2194_v35 }
 0x5cb   :  { %v2259_v43 = vmax.f32 %v2227_v51, 0.0 }
 0x5cc   :  { %3437 = vmatmul.mubr.f32.gmra.mrb[104].mxu0 %v2253_v58  ;;  %v2258_v34 = vmax.f32 %v2226_v52, 0.0 }
 0x5cd   :  { %3439 = vmatprep.mubr.f32.mxu0 %v2254_v29 }
 0x5d0   :  { %3440 = vmatmul.mubr.f32.gmra.mrb[106].mxu0 %v2255_v62 }
 0x5d1   :  { %3442 = vmatprep.mubr.f32.mxu0 %v2256_v6 }
 0x5d4   :  { %3443 = vmatmul.mubr.f32.gmra.mrb[108].mxu0 %v2257_v9 }
 0x5d5   :  { %3445 = vmatprep.mubr.f32.mxu0 %v2258_v34 }
 0x5d8   :  { %3446 = vmatmul.mubr.f32.gmra.mrb[110].mxu0 %v2259_v43 }
 0x664   :  { %v3402_v4 = vpop.f32.mrb[80].mxu0 }
 0x665   :  { %v2352_v36 = vadd.f32 %v3402_v4, %v4917_v26  ;;  %v2346_v0 = vpop.f32.mrb[81].mxu0 }
 0x666   :  { %v2347_v61 = vadd.f32 %v4917_v26, %v2346_v0 }
 0x667   :  { %2506 = vst [vmem:[#allocation8 + $0x8] sm:$0xff] %v2352_v36 }
 0x668   :  { %2505 = vst [vmem:[#allocation8] sm:$0xff] %v2347_v61 }
 0x669   :  { %v3405_v8 = vpop.f32.mrb[82].mxu0 }
 0x66a   :  { %v2362_v46 = vadd.f32 %v3405_v8, %v4917_v26  ;;  %v2356_v57 = vpop.f32.mrb[83].mxu0 }
 0x66b   :  { %v2357_v15 = vadd.f32 %v4917_v26, %v2356_v57 }
 0x66c   :  { %2508 = vst [vmem:[#allocation8 + $0x18] sm:$0xff] %v2362_v46 }
 0x66d   :  { %2507 = vst [vmem:[#allocation8 + $0x10] sm:$0xff] %v2357_v15 }
 0x66f   :  { %v3408_v41 = vpop.f32.mrb[84].mxu0 }
 0x670   :  { %v2372_v63 = vadd.f32 %v3408_v41, %v4917_v26  ;;  %v2366_v32 = vpop.f32.mrb[85].mxu0 }
 0x671   :  { %v2367_v14 = vadd.f32 %v4917_v26, %v2366_v32 }
 0x672   :  { %2510 = vst [vmem:[#allocation8 + $0x28] sm:$0xff] %v2372_v63 }
 0x673   :  { %2509 = vst [vmem:[#allocation8 + $0x20] sm:$0xff] %v2367_v14 }
 0x675   :  { %v3411_v48 = vpop.f32.mrb[86].mxu0 }
 0x676   :  { %v2382_v31 = vadd.f32 %v3411_v48, %v4917_v26  ;;  %v2376_v10 = vpop.f32.mrb[87].mxu0 }
 0x677   :  { %v2377_v22 = vadd.f32 %v4917_v26, %v2376_v10 }
 0x678   :  { %2512 = vst [vmem:[#allocation8 + $0x38] sm:$0xff] %v2382_v31 }
 0x679   :  { %2511 = vst [vmem:[#allocation8 + $0x30] sm:$0xff] %v2377_v22 }
 0x67b   :  { %v3414_v33 = vpop.f32.mrb[88].mxu0 }
 0x67c   :  { %v2392_v1 = vadd.f32 %v3414_v33, %v4917_v26  ;;  %v2386_v24 = vpop.f32.mrb[89].mxu0 }
 0x67d   :  { %v2387_v56 = vadd.f32 %v4917_v26, %v2386_v24 }
 0x67e   :  { %2514 = vst [vmem:[#allocation8 + $0x48] sm:$0xff] %v2392_v1 }
 0x67f   :  { %2513 = vst [vmem:[#allocation8 + $0x40] sm:$0xff] %v2387_v56 }
 0x681   :  { %v3417_v3 = vpop.f32.mrb[90].mxu0 }
 0x682   :  { %v2402_v54 = vadd.f32 %v3417_v3, %v4917_v26  ;;  %v2396_v2 = vpop.f32.mrb[91].mxu0 }
 0x683   :  { %v2397_v13 = vadd.f32 %v4917_v26, %v2396_v2 }
 0x684   :  { %2516 = vst [vmem:[#allocation8 + $0x58] sm:$0xff] %v2402_v54 }
 0x685   :  { %2515 = vst [vmem:[#allocation8 + $0x50] sm:$0xff] %v2397_v13 }
 0x686   :  { %v3420_v60 = vpop.f32.mrb[92].mxu0 }
 0x687   :  { %v2412_v7 = vadd.f32 %v3420_v60, %v4917_v26  ;;  %v2406_v53 = vpop.f32.mrb[93].mxu0 }
 0x688   :  { %v2407_v5 = vadd.f32 %v4917_v26, %v2406_v53 }
 0x689   :  { %2518 = vst [vmem:[#allocation8 + $0x68] sm:$0xff] %v2412_v7 }
 0x68a   :  { %2517 = vst [vmem:[#allocation8 + $0x60] sm:$0xff] %v2407_v5  ;;  %v3423_v20 = vpop.f32.mrb[94].mxu0 }
 0x68b   :  { %v2422_v23 = vadd.f32 %v3423_v20, %v4917_v26  ;;  %v2416_v12 = vpop.f32.mrb[95].mxu0 }
 0x68c   :  { %v2417_v27 = vadd.f32 %v4917_v26, %v2416_v12 }
 0x68d   :  { %2520 = vst [vmem:[#allocation8 + $0x78] sm:$0xff] %v2422_v23 }
 0x68e   :  { %2519 = vst [vmem:[#allocation8 + $0x70] sm:$0xff] %v2417_v27 }
 0x68f   :  { %v3426_v49 = vpop.f32.mrb[96].mxu0 }
 0x690   :  { %v2432_v16 = vadd.f32 %v3426_v49, %v4917_v26  ;;  %v2426_v45 = vpop.f32.mrb[97].mxu0 }
 0x691   :  { %v2427_v38 = vadd.f32 %v4917_v26, %v2426_v45 }
 0x692   :  { %2522 = vst [vmem:[#allocation8 + $0x88] sm:$0xff] %v2432_v16 }
 0x693   :  { %2521 = vst [vmem:[#allocation8 + $0x80] sm:$0xff] %v2427_v38  ;;  %v3429_v40 = vpop.f32.mrb[98].mxu0 }
 0x694   :  { %v2442_v44 = vadd.f32 %v3429_v40, %v4917_v26  ;;  %v2436_v17 = vpop.f32.mrb[99].mxu0 }
 0x695   :  { %v2437_v55 = vadd.f32 %v4917_v26, %v2436_v17 }
 0x696   :  { %2524 = vst [vmem:[#allocation8 + $0x98] sm:$0xff] %v2442_v44 }
 0x697   :  { %2523 = vst [vmem:[#allocation8 + $0x90] sm:$0xff] %v2437_v55  ;;  %v3432_v25 = vpop.f32.mrb[100].mxu0 }
 0x698   :  { %v2452_v39 = vadd.f32 %v3432_v25, %v4917_v26  ;;  %v2446_v30 = vpop.f32.mrb[101].mxu0 }
 0x699   :  { %v2447_v42 = vadd.f32 %v4917_v26, %v2446_v30 }
 0x69a   :  { %2526 = vst [vmem:[#allocation8 + $0xa8] sm:$0xff] %v2452_v39 }
 0x69b   :  { %2525 = vst [vmem:[#allocation8 + $0xa0] sm:$0xff] %v2447_v42  ;;  %v3435_v11 = vpop.f32.mrb[102].mxu0 }
 0x69c   :  { %v2462_v35 = vadd.f32 %v3435_v11, %v4917_v26  ;;  %v2456_v29 = vpop.f32.mrb[103].mxu0 }
 0x69d   :  { %v2457_v28 = vadd.f32 %v4917_v26, %v2456_v29 }
 0x69e   :  { %2528 = vst [vmem:[#allocation8 + $0xb8] sm:$0xff] %v2462_v35 }
 0x69f   :  { %2527 = vst [vmem:[#allocation8 + $0xb0] sm:$0xff] %v2457_v28  ;;  %v3438_v19 = vpop.f32.mrb[104].mxu0 }
 0x6a0   :  { %v2472_v58 = vadd.f32 %v3438_v19, %v4917_v26  ;;  %v2466_v47 = vpop.f32.mrb[105].mxu0 }
 0x6a1   :  { %v2467_v37 = vadd.f32 %v4917_v26, %v2466_v47 }
 0x6a2   :  { %2530 = vst [vmem:[#allocation8 + $0xc8] sm:$0xff] %v2472_v58 }
 0x6a3   :  { %2529 = vst [vmem:[#allocation8 + $0xc0] sm:$0xff] %v2467_v37  ;;  %v3441_v6 = vpop.f32.mrb[106].mxu0 }
 0x6a4   :  { %v2482_v18 = vadd.f32 %v3441_v6, %v4917_v26  ;;  %v2476_v52 = vpop.f32.mrb[107].mxu0 }
 0x6a5   :  { %v2477_v62 = vadd.f32 %v4917_v26, %v2476_v52 }
 0x6a6   :  { %2532 = vst [vmem:[#allocation8 + $0xd8] sm:$0xff] %v2482_v18 }
 0x6a7   :  { %2531 = vst [vmem:[#allocation8 + $0xd0] sm:$0xff] %v2477_v62  ;;  %v3444_v50 = vpop.f32.mrb[108].mxu0 }
 0x6a8   :  { %v2492_v59 = vadd.f32 %v3444_v50, %v4917_v26  ;;  %v2486_v34 = vpop.f32.mrb[109].mxu0 }
 0x6a9   :  { %v2487_v9 = vadd.f32 %v4917_v26, %v2486_v34 }
 0x6aa   :  { %2534 = vst [vmem:[#allocation8 + $0xe8] sm:$0xff] %v2492_v59 }
 0x6ab   :  { %2533 = vst [vmem:[#allocation8 + $0xe0] sm:$0xff] %v2487_v9  ;;  %v3447_v21 = vpop.f32.mrb[110].mxu0 }
 0x6ac   :  { %v2502_v51 = vadd.f32 %v3447_v21, %v4917_v26  ;;  %v2496_v43 = vpop.f32.mrb[111].mxu0 }
 0x6ad   :  { %v2497_v4 = vadd.f32 %v4917_v26, %v2496_v43 }
 0x6ae   :  { %2536 = vst [vmem:[#allocation8 + $0xf8] sm:$0xff] %v2502_v51 }
 0x6af   :  { %2535 = vst [vmem:[#allocation8 + $0xf0] sm:$0xff] %v2497_v4 }
 0x6b0   :  { %3883 = shalt.err (!%p3880_p0)
}
 0x6b1   :  { %s3884_s2 = scalar_lea.hbm %s4973_s7, 4096 }
 0x6b2   :  { %p3885_p1 = scmp.ne.s32.totalorder %s4973_s7, %s3884_s2  ;;  %p3888_p2 = scmp.lt.u32.totalorder %s3884_s2, %s4973_s7 }
 0x6b4   :  { %p3890_p3 = pnand %p3888_p2, %p3885_p1 }
 0x6b6   :  { %3893 = shalt.err (!%p3890_p3)
}
 0x6b7   :  { %2548 = dma.vmem_to_hbm [thread:$0]  %s2543_s22, 4096, %s4973_s7, [#allocation4], %s3902_s13, %s3902_s13, %s3903_s14  }
 0x6b8   :  { %3898 = dma.done.wait [#allocation4], 4096  }
 0x6b9   :  { %3899 = vsyncadd [#allocation4], 4294963200 }
 0x6ba   :  { %2552 = vsyncpa [#allocation3], 1 }
 0x6bb   :  { %2553 = vsyncpa [#allocation6], 1 }
 0x6bc   :  { %2554 = vsyncpa [#allocation4], 1 }

</bundles_post_ra>
